<compile_context>
chip_gen: v5e
topology: v5e:2x2
jax: 0.10.0
libtpu: 0.0.40
codegen_flags: <defaults>
</compile_context>

<pallas_src>
import functools
import math

import jax
import jax.numpy as jnp
from jax.experimental import pallas as pl
from jax.experimental.pallas import tpu as pltpu

LANES = 128


def _lsr32(x, k):
    """Logical right shift of an int32 array by a static amount k."""
    return jnp.right_shift(x, k) & jnp.int32((1 << (32 - k)) - 1)


def _fmix32(x):
    """murmur3 32-bit finalizer (good avalanche on sequential counters)."""
    x = x ^ _lsr32(x, 16)
    x = x * jnp.int32(-2048144789)   # 0x85EBCA6B
    x = x ^ _lsr32(x, 13)
    x = x * jnp.int32(-1028477387)   # 0xC2B2AE35
    x = x ^ _lsr32(x, 16)
    return x


def _gaussian_noise_kernel(seed_ref, x_ref, o_ref, *, sigma, block_elems):
    rows, cols = x_ref.shape
    pid = pl.program_id(0)

    # Global linear element index of every entry in this block (int32 wrap is
    # harmless: it only feeds the hash).
    row_idx = jax.lax.broadcasted_iota(jnp.int32, (rows, cols), 0)
    col_idx = jax.lax.broadcasted_iota(jnp.int32, (rows, cols), 1)
    gidx = pid * jnp.int32(block_elems) + row_idx * jnp.int32(cols) + col_idx

    # Mix the user seed (golden-ratio multiply) and combine with per-element
    # counters; each element consumes two counters -> two independent streams.
    base = seed_ref[0] * jnp.int32(-1640531527)  # 0x9E3779B9
    c = gidx * jnp.int32(2)
    k1 = _fmix32(c ^ base)
    k2 = _fmix32((c + jnp.int32(1)) ^ base)

    # 24-bit uniforms in (0, 1); never exactly 0, so log() is safe.
    scale = jnp.float32(1.0 / 16777216.0)
    u1 = (_lsr32(k1, 8).astype(jnp.float32) + jnp.float32(0.5)) * scale
    u2 = (_lsr32(k2, 8).astype(jnp.float32) + jnp.float32(0.5)) * scale

    # Box-Muller -> standard normal.
    r = jnp.sqrt(jnp.float32(-2.0) * jnp.log(u1))
    theta = jnp.float32(2.0 * math.pi) * u2
    noise = r * jnp.cos(theta)

    o_ref[...] = (x_ref[...].astype(jnp.float32)
                  + jnp.float32(sigma) * noise).astype(o_ref.dtype)


def gaussian_noise(img, *, sigma=0.1, seed=0, target_block_bytes=2 * 1024 * 1024):
    """img: any-shape float array (NCHW for images). Returns img + sigma*N(0,1)."""
    orig_shape = img.shape
    orig_dtype = img.dtype
    n = img.size

    flat = img.reshape(-1)
    # Minimal padding: only up to a multiple of 128, and skipped when already
    # aligned (the common case for image tensors) -> no extra HBM passes.
    if n % LANES != 0:
        n_pad = pl.cdiv(n, LANES) * LANES
        flat = jnp.pad(flat, (0, n_pad - n))
    else:
        n_pad = n

    # Lane-dense width: widest of {1024, 512, 256, 128} dividing the count.
    width = LANES
    for w in (1024, 512, 256):
        if n_pad % w == 0:
            width = w
            break
    rows = n_pad // width

    # Block rows: ~target_block_bytes of f32 per block (2 MiB default; with
    # in+out double buffering that is ~8 MiB, safe on v5e/v6e/v7x defaults),
    # capped at the full array for small inputs.
    target_rows = max(8, (target_block_bytes // (4 * width)) // 8 * 8)
    row_tile = rows if rows <= target_rows else target_rows
    grid = pl.cdiv(rows, row_tile)

    x2d = flat.reshape(rows, width)
    seed_arr = jnp.asarray([seed], dtype=jnp.int32)

    out2d = pl.pallas_call(
        functools.partial(
            _gaussian_noise_kernel,
            sigma=float(sigma),
            block_elems=row_tile * width,
        ),
        out_shape=jax.ShapeDtypeStruct((rows, width), orig_dtype),
        grid_spec=pltpu.PrefetchScalarGridSpec(
            num_scalar_prefetch=1,
            grid=(grid,),
            in_specs=[pl.BlockSpec((row_tile, width), lambda i, seed_ref: (i, 0))],
            out_specs=pl.BlockSpec((row_tile, width), lambda i, seed_ref: (i, 0)),
        ),
        compiler_params=pltpu.CompilerParams(
            dimension_semantics=("parallel",),  # independent tiles -> megacore OK
        ),
    )(seed_arr, x2d)

    out = out2d.reshape(-1)
    if n_pad != n:
        out = out[:n]
    return out.reshape(orig_shape)


if __name__ == "__main__":
    key = jax.random.PRNGKey(0)
    x = jax.random.normal(key, (2, 4, 16, 16), dtype=jnp.float32)  # NCHW

    sigma = 0.1
    out = gaussian_noise(x, sigma=sigma, seed=1234)
    out = jax.block_until_ready(out)

    assert out.shape == x.shape and out.dtype == x.dtype

    # Sanity: the added noise should roughly match N(0, sigma^2) statistics.
    noise = (out - x) / sigma
    m = float(jnp.mean(noise))
    s = float(jnp.std(noise))
    assert abs(m) < 0.2, f"noise mean off: {m}"
    assert 0.7 < s < 1.3, f"noise std off: {s}"

    print("KERNEL_OK")
</pallas_src>

<mosaic_0001>
module attributes {stable_mosaic.version = 11 : i64} {
  func.func @_gaussian_noise_kernel(%arg0: i32, %arg1: memref<1xi32, #tpu.memory_space<smem>>, %arg2: memref<2x1024xf32, #tpu.memory_space<vmem>>, %arg3: memref<2x1024xf32, #tpu.memory_space<vmem>>) attributes {dimension_semantics = [#tpu.dimension_semantics<parallel>], iteration_bounds = array<i64: 1>, scalar_prefetch = 1 : i64, scratch_operands = 0 : i64, tpu.core_type = #tpu.core_type<tc>, window_params = [{transform_indices = @transform_0, window_bounds = array<i64: 2, 1024>}, {transform_indices = @transform_1, window_bounds = array<i64: 2, 1024>}]} {
    %0 = tpu.iota {dimensions = array<i32: 0>} : vector<2x1024xi32>
    %1 = tpu.iota {dimensions = array<i32: 1>} : vector<2x1024xi32>
    %c2048_i32 = arith.constant 2048 : i32
    %2 = arith.muli %arg0, %c2048_i32 : i32
    %c1024_i32 = arith.constant 1024 : i32
    %3 = vector.broadcast %c1024_i32 : i32 to vector<2x1024xi32>
    %4 = arith.muli %0, %3 : vector<2x1024xi32>
    %5 = vector.broadcast %2 : i32 to vector<2x1024xi32>
    %6 = arith.addi %5, %4 : vector<2x1024xi32>
    %7 = arith.addi %6, %1 : vector<2x1024xi32>
    %c0 = arith.constant 0 : index
    %8 = memref.load %arg1[%c0] : memref<1xi32, #tpu.memory_space<smem>>
    %c-1640531527_i32 = arith.constant -1640531527 : i32
    %9 = arith.muli %8, %c-1640531527_i32 : i32
    %c2_i32 = arith.constant 2 : i32
    %10 = vector.broadcast %c2_i32 : i32 to vector<2x1024xi32>
    %11 = arith.muli %7, %10 : vector<2x1024xi32>
    %12 = vector.broadcast %9 : i32 to vector<2x1024xi32>
    %13 = arith.xori %11, %12 : vector<2x1024xi32>
    %c16_i32 = arith.constant 16 : i32
    %14 = vector.broadcast %c16_i32 : i32 to vector<2x1024xi32>
    %15 = arith.shrsi %13, %14 : vector<2x1024xi32>
    %c65535_i32 = arith.constant 65535 : i32
    %16 = vector.broadcast %c65535_i32 : i32 to vector<2x1024xi32>
    %17 = arith.andi %15, %16 : vector<2x1024xi32>
    %18 = arith.xori %13, %17 : vector<2x1024xi32>
    %c-2048144789_i32 = arith.constant -2048144789 : i32
    %19 = vector.broadcast %c-2048144789_i32 : i32 to vector<2x1024xi32>
    %20 = arith.muli %18, %19 : vector<2x1024xi32>
    %c13_i32 = arith.constant 13 : i32
    %21 = vector.broadcast %c13_i32 : i32 to vector<2x1024xi32>
    %22 = arith.shrsi %20, %21 : vector<2x1024xi32>
    %c524287_i32 = arith.constant 524287 : i32
    %23 = vector.broadcast %c524287_i32 : i32 to vector<2x1024xi32>
    %24 = arith.andi %22, %23 : vector<2x1024xi32>
    %25 = arith.xori %20, %24 : vector<2x1024xi32>
    %c-1028477387_i32 = arith.constant -1028477387 : i32
    %26 = vector.broadcast %c-1028477387_i32 : i32 to vector<2x1024xi32>
    %27 = arith.muli %25, %26 : vector<2x1024xi32>
    %c16_i32_0 = arith.constant 16 : i32
    %28 = vector.broadcast %c16_i32_0 : i32 to vector<2x1024xi32>
    %29 = arith.shrsi %27, %28 : vector<2x1024xi32>
    %c65535_i32_1 = arith.constant 65535 : i32
    %30 = vector.broadcast %c65535_i32_1 : i32 to vector<2x1024xi32>
    %31 = arith.andi %29, %30 : vector<2x1024xi32>
    %32 = arith.xori %27, %31 : vector<2x1024xi32>
    %c1_i32 = arith.constant 1 : i32
    %33 = vector.broadcast %c1_i32 : i32 to vector<2x1024xi32>
    %34 = arith.addi %11, %33 : vector<2x1024xi32>
    %35 = vector.broadcast %9 : i32 to vector<2x1024xi32>
    %36 = arith.xori %34, %35 : vector<2x1024xi32>
    %c16_i32_2 = arith.constant 16 : i32
    %37 = vector.broadcast %c16_i32_2 : i32 to vector<2x1024xi32>
    %38 = arith.shrsi %36, %37 : vector<2x1024xi32>
    %c65535_i32_3 = arith.constant 65535 : i32
    %39 = vector.broadcast %c65535_i32_3 : i32 to vector<2x1024xi32>
    %40 = arith.andi %38, %39 : vector<2x1024xi32>
    %41 = arith.xori %36, %40 : vector<2x1024xi32>
    %c-2048144789_i32_4 = arith.constant -2048144789 : i32
    %42 = vector.broadcast %c-2048144789_i32_4 : i32 to vector<2x1024xi32>
    %43 = arith.muli %41, %42 : vector<2x1024xi32>
    %c13_i32_5 = arith.constant 13 : i32
    %44 = vector.broadcast %c13_i32_5 : i32 to vector<2x1024xi32>
    %45 = arith.shrsi %43, %44 : vector<2x1024xi32>
    %c524287_i32_6 = arith.constant 524287 : i32
    %46 = vector.broadcast %c524287_i32_6 : i32 to vector<2x1024xi32>
    %47 = arith.andi %45, %46 : vector<2x1024xi32>
    %48 = arith.xori %43, %47 : vector<2x1024xi32>
    %c-1028477387_i32_7 = arith.constant -1028477387 : i32
    %49 = vector.broadcast %c-1028477387_i32_7 : i32 to vector<2x1024xi32>
    %50 = arith.muli %48, %49 : vector<2x1024xi32>
    %c16_i32_8 = arith.constant 16 : i32
    %51 = vector.broadcast %c16_i32_8 : i32 to vector<2x1024xi32>
    %52 = arith.shrsi %50, %51 : vector<2x1024xi32>
    %c65535_i32_9 = arith.constant 65535 : i32
    %53 = vector.broadcast %c65535_i32_9 : i32 to vector<2x1024xi32>
    %54 = arith.andi %52, %53 : vector<2x1024xi32>
    %55 = arith.xori %50, %54 : vector<2x1024xi32>
    %c8_i32 = arith.constant 8 : i32
    %56 = vector.broadcast %c8_i32 : i32 to vector<2x1024xi32>
    %57 = arith.shrsi %32, %56 : vector<2x1024xi32>
    %c16777215_i32 = arith.constant 16777215 : i32
    %58 = vector.broadcast %c16777215_i32 : i32 to vector<2x1024xi32>
    %59 = arith.andi %57, %58 : vector<2x1024xi32>
    %60 = arith.sitofp %59 : vector<2x1024xi32> to vector<2x1024xf32>
    %cst = arith.constant 5.000000e-01 : f32
    %61 = vector.broadcast %cst : f32 to vector<2x1024xf32>
    %62 = arith.addf %60, %61 : vector<2x1024xf32>
    %cst_10 = arith.constant 5.96046448E-8 : f32
    %63 = vector.broadcast %cst_10 : f32 to vector<2x1024xf32>
    %64 = arith.mulf %62, %63 : vector<2x1024xf32>
    %c8_i32_11 = arith.constant 8 : i32
    %65 = vector.broadcast %c8_i32_11 : i32 to vector<2x1024xi32>
    %66 = arith.shrsi %55, %65 : vector<2x1024xi32>
    %c16777215_i32_12 = arith.constant 16777215 : i32
    %67 = vector.broadcast %c16777215_i32_12 : i32 to vector<2x1024xi32>
    %68 = arith.andi %66, %67 : vector<2x1024xi32>
    %69 = arith.sitofp %68 : vector<2x1024xi32> to vector<2x1024xf32>
    %cst_13 = arith.constant 5.000000e-01 : f32
    %70 = vector.broadcast %cst_13 : f32 to vector<2x1024xf32>
    %71 = arith.addf %69, %70 : vector<2x1024xf32>
    %cst_14 = arith.constant 5.96046448E-8 : f32
    %72 = vector.broadcast %cst_14 : f32 to vector<2x1024xf32>
    %73 = arith.mulf %71, %72 : vector<2x1024xf32>
    %74 = math.log %64 : vector<2x1024xf32>
    %cst_15 = arith.constant -2.000000e+00 : f32
    %75 = vector.broadcast %cst_15 : f32 to vector<2x1024xf32>
    %76 = arith.mulf %75, %74 : vector<2x1024xf32>
    %77 = math.sqrt %76 : vector<2x1024xf32>
    %cst_16 = arith.constant 6.28318548 : f32
    %78 = vector.broadcast %cst_16 : f32 to vector<2x1024xf32>
    %79 = arith.mulf %78, %73 : vector<2x1024xf32>
    %80 = math.cos %79 : vector<2x1024xf32>
    %81 = arith.mulf %77, %80 : vector<2x1024xf32>
    %c0_17 = arith.constant 0 : index
    %c0_18 = arith.constant 0 : index
    %82 = vector.load %arg2[%c0_17, %c0_18] : memref<2x1024xf32, #tpu.memory_space<vmem>>, vector<2x1024xf32>
    %cst_19 = arith.constant 1.000000e-01 : f32
    %83 = vector.broadcast %cst_19 : f32 to vector<2x1024xf32>
    %84 = arith.mulf %83, %81 : vector<2x1024xf32>
    %85 = arith.addf %82, %84 : vector<2x1024xf32>
    %c0_20 = arith.constant 0 : index
    %c0_21 = arith.constant 0 : index
    %86 = vector.load %arg3[%c0_20, %c0_21] : memref<2x1024xf32, #tpu.memory_space<vmem>>, vector<2x1024xf32>
    tpu.vector_store %arg3[%c0_20, %c0_21], %85 {strides = array<i32>} : memref<2x1024xf32, #tpu.memory_space<vmem>>, vector<2x1024xf32>,
    return
  }
  func.func @transform_0(%arg0: i32, %arg1: memref<1xi32, #tpu.memory_space<smem>>) -> (i32, i32) {
    %c0_i32 = arith.constant 0 : i32
    %c0_i32_0 = arith.constant 0 : i32
    return %arg0, %c0_i32 : i32, i32
  }
  func.func @transform_1(%arg0: i32, %arg1: memref<1xi32, #tpu.memory_space<smem>>) -> (i32, i32) {
    %c0_i32 = arith.constant 0 : i32
    %c0_i32_0 = arith.constant 0 : i32
    return %arg0, %c0_i32 : i32, i32
  }
}

</mosaic_0001>

<bundles_post_ra>
// kernel: tpu_custom_call.1
= control target key start
LH: loop header
LB: loop body
LE: loop exit
PB: predicated region body
PF: predicated region fallthrough
CT: control target
= control target key end

     0   :  { %8 = vsyncpa [#allocation5], 0  ;;  %s3475_s0 = inlined_call_operand.<no memory space> [shape: s32[1], index: 0, kind: input, shape index: {}]   ;;  %s3476_s1 = inlined_call_operand.hbm [shape: f32[2,1024], index: 1, kind: input, shape index: {}]   ;;  %s3477_s2 = inlined_call_operand.hbm [shape: f32[2,1024], index: 2, kind: output, shape index: {}]  }
   0x1   :  { %9 = vsyncpa [#allocation6], 0  ;;  %s15_s11 = sshll.u32 %s3476_s1, 4  ;;  %s1944_s12 = smov [#allocation4]   ;;  %s16_s11 = int_to_ptr.hbm [resolvable:$true] %s15_s11 }
   0x2   :  { %s17_s13 = sshll.u32 %s1944_s12, 4  ;;  %s18_s13 = int_to_ptr.vmem [resolvable:$true] %s17_s13 }
   0x3   :  { %20 = dma.hbm_to_vmem [thread:$0]  %s16_s11, 256, %s18_s13, [#allocation5]  }
   0x4   :  { %1940 = dma.done.wait [#allocation5], 256  }
   0x5   :  { %1941 = vsyncadd [#allocation5], 4294967040  ;;  %v25_v0 = vlaneseq  ;;  %s49_s16 = smul.u32 2654435769, %s3475_s0  ;;  %s1952_s0 = smov [#allocation7]  }
   0x6   :  { %s1751_s1 = sshll.u32 %s1952_s0, 4  ;;  %s1753_s19 = sshll.u32 %s3477_s2, 4  ;;  %s1752_s1 = int_to_ptr.vmem [resolvable:$true] %s1751_s1  ;;  %s1754_s19 = int_to_ptr.hbm [resolvable:$true] %s1753_s19 }
   0x7   :  { %v26_v1 = vshrl.u32 %v25_v0, 7  ;;  %v28_v2 = vand.u32 127, %v25_v0  ;;  %v1974_v11 = vstv %s49_s16 }
   0x9   :  { %v29_v3 = vadd.s32 128, %v28_v2  ;;  %v30_v4 = vadd.s32 256, %v28_v2  ;;  %v31_v5 = vadd.s32 384, %v28_v2  ;;  %v32_v6 = vadd.s32 512, %v28_v2 }
   0xa   :  { %v33_v7 = vadd.s32 640, %v28_v2  ;;  %v34_v8 = vadd.s32 768, %v28_v2  ;;  %v35_v9 = vadd.s32 896, %v28_v2  ;;  %v37_v10 = vmul.u32 1024, %v26_v1 }
   0xc   :  { %v40_v12 = vadd.s32 %v37_v10, %v28_v2  ;;  %v41_v13 = vadd.s32 %v37_v10, %v29_v3  ;;  %v42_v14 = vadd.s32 %v37_v10, %v30_v4  ;;  %v43_v15 = vadd.s32 %v37_v10, %v31_v5 }
   0xd   :  { %v44_v16 = vadd.s32 %v37_v10, %v32_v6  ;;  %v45_v17 = vadd.s32 %v37_v10, %v33_v7  ;;  %v46_v18 = vadd.s32 %v37_v10, %v34_v8  ;;  %v47_v19 = vadd.s32 %v37_v10, %v35_v9 }
   0xe   :  { %v50_v20 = vmul.u32 2, %v40_v12  ;;  %v51_v21 = vmul.u32 2, %v41_v13  ;;  %v52_v22 = vmul.u32 2, %v42_v14  ;;  %v53_v23 = vmul.u32 2, %v43_v15 }
   0xf   :  { %v54_v24 = vmul.u32 2, %v44_v16  ;;  %v55_v25 = vmul.u32 2, %v45_v17  ;;  %v56_v26 = vmul.u32 2, %v46_v18  ;;  %v57_v27 = vmul.u32 2, %v47_v19 }
  0x10   :  { %v59_v28 = vxor.u32 %v1974_v11, %v50_v20  ;;  %v60_v29 = vxor.u32 %v1974_v11, %v51_v21  ;;  %v61_v30 = vxor.u32 %v1974_v11, %v52_v22  ;;  %v62_v31 = vxor.u32 %v1974_v11, %v53_v23 }
  0x11   :  { %v63_v32 = vxor.u32 %v1974_v11, %v54_v24  ;;  %v64_v33 = vxor.u32 %v1974_v11, %v55_v25  ;;  %v65_v34 = vxor.u32 %v1974_v11, %v56_v26  ;;  %v66_v35 = vxor.u32 %v1974_v11, %v57_v27 }
  0x12   :  { %v155_v36 = vadd.s32 1, %v50_v20  ;;  %v156_v42 = vadd.s32 1, %v51_v21  ;;  %v157_v52 = vadd.s32 1, %v52_v22  ;;  %v1763_v53 = vshrl.u32 %v59_v28, 16 }
  0x13   :  { %v1764_v54 = vshrl.u32 %v60_v29, 16  ;;  %v1765_v55 = vshrl.u32 %v61_v30, 16  ;;  %v158_v56 = vadd.s32 1, %v53_v23  ;;  %v159_v57 = vadd.s32 1, %v54_v24 }
  0x14   :  { %v163_v37 = vxor.u32 %v155_v36, %v1974_v11  ;;  %v164_v44 = vxor.u32 %v156_v42, %v1974_v11  ;;  %v1766_v59 = vshrl.u32 %v62_v31, 16  ;;  %v1767_v60 = vshrl.u32 %v63_v32, 16 }
  0x15   :  { %v160_v61 = vadd.s32 1, %v55_v25  ;;  %v1768_v63 = vshrl.u32 %v64_v33, 16  ;;  %v161_v0 = vadd.s32 1, %v56_v26  ;;  %v162_v1 = vadd.s32 1, %v57_v27 }
  0x16   :  { %v1787_v38 = vshrl.u32 %v163_v37, 16  ;;  %v1788_v46 = vshrl.u32 %v164_v44, 16  ;;  %v165_v2 = vxor.u32 %v157_v52, %v1974_v11  ;;  %v1769_v3 = vshrl.u32 %v65_v34, 16 }
  0x17   :  { %v1770_v4 = vshrl.u32 %v66_v35, 16  ;;  %v83_v5 = vxor.u32 %v1763_v53, %v59_v28  ;;  %v84_v6 = vxor.u32 %v1764_v54, %v60_v29  ;;  %v85_v7 = vxor.u32 %v1765_v55, %v61_v30 }
  0x18   :  { %v187_v39 = vxor.u32 %v1787_v38, %v163_v37  ;;  %v188_v48 = vxor.u32 %v1788_v46, %v164_v44  ;;  %v166_v8 = vxor.u32 %v158_v56, %v1974_v11  ;;  %v167_v9 = vxor.u32 %v159_v57, %v1974_v11 }
  0x19   :  { %v86_v12 = vxor.u32 %v1766_v59, %v62_v31  ;;  %v87_v13 = vxor.u32 %v1767_v60, %v63_v32  ;;  %v168_v14 = vxor.u32 %v160_v61, %v1974_v11  ;;  %v88_v16 = vxor.u32 %v1768_v63, %v64_v33 }
  0x1a   :  { %v195_v40 = vmul.u32 2246822507, %v187_v39  ;;  %v196_v50 = vmul.u32 2246822507, %v188_v48  ;;  %v169_v17 = vxor.u32 %v161_v0, %v1974_v11  ;;  %v170_v18 = vxor.u32 %v162_v1, %v1974_v11 }
  0x1b   :  { %v1789_v19 = vshrl.u32 %v165_v2, 16  ;;  %v89_v20 = vxor.u32 %v1769_v3, %v65_v34  ;;  %v90_v21 = vxor.u32 %v1770_v4, %v66_v35  ;;  %v91_v22 = vmul.u32 2246822507, %v83_v5 }
  0x1c   :  { %v1795_v41 = vshrl.u32 %v195_v40, 13  ;;  %v1796_v58 = vshrl.u32 %v196_v50, 13  ;;  %v92_v23 = vmul.u32 2246822507, %v84_v6  ;;  %v93_v24 = vmul.u32 2246822507, %v85_v7 }
  0x1d   :  { %v1790_v25 = vshrl.u32 %v166_v8, 16  ;;  %v1791_v26 = vshrl.u32 %v167_v9, 16  ;;  %v94_v28 = vmul.u32 2246822507, %v86_v12  ;;  %v95_v29 = vmul.u32 2246822507, %v87_v13 }
  0x1e   :  { %v219_v43 = vxor.u32 %v1795_v41, %v195_v40  ;;  %v220_v10 = vxor.u32 %v1796_v58, %v196_v50  ;;  %v1792_v30 = vshrl.u32 %v168_v14, 16  ;;  %v96_v32 = vmul.u32 2246822507, %v88_v16 }
  0x1f   :  { %v1793_v36 = vshrl.u32 %v169_v17, 16  ;;  %v1794_v33 = vshrl.u32 %v170_v18, 16  ;;  %v189_v37 = vxor.u32 %v1789_v19, %v165_v2  ;;  %v97_v38 = vmul.u32 2246822507, %v89_v20 }
  0x20   :  { %v227_v45 = vmul.u32 3266489909, %v219_v43  ;;  %v228_v27 = vmul.u32 3266489909, %v220_v10  ;;  %v98_v39 = vmul.u32 2246822507, %v90_v21  ;;  %v190_v34 = vxor.u32 %v1790_v25, %v166_v8 }
  0x21   :  { %v1771_v11 = vshrl.u32 %v91_v22, 13  ;;  %v1772_v40 = vshrl.u32 %v92_v23, 13  ;;  %v191_v35 = vxor.u32 %v1791_v26, %v167_v9  ;;  %v1773_v42 = vshrl.u32 %v93_v24, 13 }
  0x22   :  { %v1803_v47 = vshrl.u32 %v227_v45, 16  ;;  %v1804_v41 = vshrl.u32 %v228_v27, 16  ;;  %v1774_v43 = vshrl.u32 %v94_v28, 13  ;;  %v192_v44 = vxor.u32 %v1792_v30, %v168_v14 }
  0x23   :  { %v1775_v46 = vshrl.u32 %v95_v29, 13  ;;  %v194_v48 = vxor.u32 %v1794_v33, %v170_v18  ;;  %v1776_v50 = vshrl.u32 %v96_v32, 13  ;;  %v1778_v52 = vshrl.u32 %v98_v39, 13 }
  0x24   :  { %v251_v49 = vxor.u32 %v1803_v47, %v227_v45  ;;  %v193_v47 = vxor.u32 %v1793_v36, %v169_v17  ;;  %v115_v53 = vxor.u32 %v1771_v11, %v91_v22  ;;  %v116_v54 = vxor.u32 %v1772_v40, %v92_v23 }
  0x25   :  { %v198_v55 = vmul.u32 2246822507, %v190_v34  ;;  %v199_v56 = vmul.u32 2246822507, %v191_v35  ;;  %v252_v57 = vxor.u32 %v1804_v41, %v228_v27  ;;  %v117_v58 = vxor.u32 %v1773_v42, %v93_v24 }
  0x26   :  { %v1819_v51 = vshrl.u32 %v251_v49, 8  ;;  %v197_v49 = vmul.u32 2246822507, %v189_v37  ;;  %v118_v59 = vxor.u32 %v1774_v43, %v94_v28  ;;  %v200_v60 = vmul.u32 2246822507, %v192_v44 }
  0x27   :  { %v201_v63 = vmul.u32 2246822507, %v193_v47  ;;  %v202_v0 = vmul.u32 2246822507, %v194_v48  ;;  %v120_v2 = vxor.u32 %v1776_v50, %v96_v32  ;;  %v122_v4 = vxor.u32 %v1778_v52, %v98_v39 }
  0x28   :  { %v315_v62 = vcvt.s32.f32 %v1819_v51  ;;  %v1777_v51 = vshrl.u32 %v97_v38, 13  ;;  %v1797_v1 = vshrl.u32 %v197_v49, 13  ;;  %v123_v5 = vmul.u32 3266489909, %v115_v53 }
  0x29   :  { %v124_v6 = vmul.u32 3266489909, %v116_v54  ;;  %v1798_v7 = vshrl.u32 %v198_v55, 13  ;;  %v1799_v8 = vshrl.u32 %v199_v56, 13  ;;  %v1820_v9 = vshrl.u32 %v252_v57, 8 }
  0x2a   :  { %v323_v15 = vadd.f32 0.5, %v315_v62  ;;  %v119_v62 = vxor.u32 %v1775_v46, %v95_v29  ;;  %v121_v3 = vxor.u32 %v1777_v51, %v97_v38  ;;  %v125_v10 = vmul.u32 3266489909, %v117_v58 }
  0x2b   :  { %v126_v12 = vmul.u32 3266489909, %v118_v59  ;;  %v1800_v13 = vshrl.u32 %v200_v60, 13  ;;  %v1801_v16 = vshrl.u32 %v201_v63, 13  ;;  %v1802_v17 = vshrl.u32 %v202_v0, 13 }
  0x2c   :  { %v331_v31 = vmul.f32 5.9604645e-08, %v323_v15  ;;  %v127_v15 = vmul.u32 3266489909, %v119_v62  ;;  %v221_v18 = vxor.u32 %v1797_v1, %v197_v49  ;;  %v128_v19 = vmul.u32 3266489909, %v120_v2 }
  0x2d   :  { %v129_v20 = vmul.u32 3266489909, %v121_v3  ;;  %v130_v21 = vmul.u32 3266489909, %v122_v4  ;;  %v1779_v22 = vshrl.u32 %v123_v5, 16  ;;  %v222_v23 = vxor.u32 %v1798_v7, %v198_v55 }
  0x2e   :  { %v1992_v45 = vmul.f32 6.2831855, %v331_v31  ;;  %v223_v24 = vxor.u32 %v1799_v8, %v199_v56  ;;  %v316_v25 = vcvt.s32.f32 %v1820_v9  ;;  %v1780_v26 = vshrl.u32 %v124_v6, 16 }
  0x2f   :  { %v1781_v27 = vshrl.u32 %v125_v10, 16  ;;  %v224_v28 = vxor.u32 %v1800_v13, %v200_v60  ;;  %v1782_v30 = vshrl.u32 %v126_v12, 16  ;;  %v225_v31 = vxor.u32 %v1801_v16, %v201_v63 }
  0x30   :  { %3537 = vst [vmem:[#allocation10_spill] sm:$0xff] %v1992_v45  ;;  %v470_v61 = vand.u32 2139095040, %v1992_v45  ;;  %v226_v32 = vxor.u32 %v1802_v17, %v202_v0  ;;  %v229_v36 = vmul.u32 3266489909, %v221_v18  ;;  %v1783_v33 = vshrl.u32 %v127_v15, 16 }
  0x31   :  { %v1784_v37 = vshrl.u32 %v128_v19, 16  ;;  %v1785_v38 = vshrl.u32 %v129_v20, 16  ;;  %v1786_v39 = vshrl.u32 %v130_v21, 16  ;;  %v147_v11 = vxor.u32 %v1779_v22, %v123_v5 }
  0x32   :  { %v471_v14 = vshrl.u32 %v470_v61, 23  ;;  %v230_v40 = vmul.u32 3266489909, %v222_v23  ;;  %v231_v34 = vmul.u32 3266489909, %v223_v24  ;;  %v324_v35 = vadd.f32 0.5, %v316_v25 }
  0x33   :  { %v148_v41 = vxor.u32 %v1780_v26, %v124_v6  ;;  %v149_v42 = vxor.u32 %v1781_v27, %v125_v10  ;;  %v232_v43 = vmul.u32 3266489909, %v224_v28  ;;  %v150_v46 = vxor.u32 %v1782_v30, %v126_v12 }
  0x34   :  { %v1827_v29 = vadd.s32 4294967169, %v471_v14  ;;  %v233_v47 = vmul.u32 3266489909, %v225_v31  ;;  %v234_v48 = vmul.u32 3266489909, %v226_v32  ;;  %v1805_v49 = vshrl.u32 %v229_v36, 16 }
  0x35   :  { %v151_v50 = vxor.u32 %v1783_v33, %v127_v15  ;;  %v152_v51 = vxor.u32 %v1784_v37, %v128_v19  ;;  %v153_v52 = vxor.u32 %v1785_v38, %v129_v20  ;;  %v154_v53 = vxor.u32 %v1786_v39, %v130_v21 }
  0x36   :  { %v477_v44 = vadd.s32 1, %v1827_v29  ;;  %v1806_v54 = vshrl.u32 %v230_v40, 16  ;;  %v1807_v55 = vshrl.u32 %v231_v34, 16  ;;  %v1811_v56 = vshrl.u32 %v147_v11, 8 }
  0x37   :  { %v332_v57 = vmul.f32 5.9604645e-08, %v324_v35  ;;  %v1808_v58 = vshrl.u32 %v232_v43, 16  ;;  %v1812_v59 = vshrl.u32 %v148_v41, 8  ;;  %v1813_v60 = vshrl.u32 %v149_v42, 8 }
  0x38   :  { %vm478_vm0 = vcmp.gt.s32.totalorder %v477_v44, 0  ;;  %v1809_v61 = vshrl.u32 %v233_v47, 16  ;;  %v1810_v62 = vshrl.u32 %v234_v48, 16  ;;  %v1995_v63 = vxor.u32 %v1805_v49, %v229_v36 }
  0x39   :  { %v1814_v0 = vshrl.u32 %v150_v46, 8  ;;  %v1815_v1 = vshrl.u32 %v151_v50, 8  ;;  %v1816_v2 = vshrl.u32 %v152_v51, 8  ;;  %v1817_v3 = vshrl.u32 %v153_v52, 8 }
  0x3a   :  { %v3488_v4 = vand.u32 2147483647, %v1992_v45  ;;  %v1818_v5 = vshrl.u32 %v154_v53, 8  ;;  %v275_v6 = vcvt.s32.f32 %v1811_v56  ;;  %v1998_v7 = vmul.f32 6.2831855, %v332_v57 }
  0x3b   :  { %v479_v8 = vsel %vm478_vm0, %v477_v44, 0  ;;  %v2000_v9 = vxor.u32 %v1806_v54, %v230_v40  ;;  %v2002_v10 = vxor.u32 %v1807_v55, %v231_v34  ;;  %v276_v12 = vcvt.s32.f32 %v1812_v59 }
  0x3c   :  { %3538 = vst [vmem:[#allocation11_spill] sm:$0xff] %v1998_v7  ;;  %v277_v13 = vcvt.s32.f32 %v1813_v60  ;;  %v2004_v14 = vxor.u32 %v1808_v58, %v232_v43  ;;  %v2006_v15 = vxor.u32 %v1809_v61, %v233_v47  ;;  %v2008_v16 = vxor.u32 %v1810_v62, %v234_v48 }
  0x3d   :  { %v278_v17 = vcvt.s32.f32 %v1814_v0  ;;  %v2010_v18 = vcvt.s32.f32 %v1815_v1  ;;  %v2012_v19 = vcvt.s32.f32 %v1816_v2  ;;  %v474_v20 = vand.u32 8388607, %v3488_v4 }
  0x3e   :  { %v481_v21 = vand.u32 31, %v479_v8  ;;  %v2016_v22 = vcvt.s32.f32 %v1817_v3  ;;  %v2018_v23 = vcvt.s32.f32 %v1818_v5  ;;  %v2020_v24 = vadd.f32 0.5, %v275_v6 }
  0x3f   :  { %v624_v25 = vand.u32 2139095040, %v1998_v7  ;;  %v2023_v26 = vadd.f32 0.5, %v276_v12  ;;  %v2025_v27 = vadd.f32 0.5, %v277_v13  ;;  %v1821_v29 = vshrl.u32 %v1995_v63, 8 }
  0x40   :  { %v482_v28 = vsub.s32 32, %v481_v21  ;;  %v3486_v30 = vmov 683565275   ;;  %v475_v32 = vor.u32 8388608, %v474_v20  ;;  %v480_v36 = vshrl.u32 %v479_v8, 5 }
  0x41   :  { %v484_v31 = vshll.u32 %v3486_v30, %v481_v21  ;;  %v3484_v33 = vmov 2475754826   ;;  %v3482_v39 = vmov 2131351028   ;;  %v625_v34 = vshrl.u32 %v624_v25, 23 }
  0x42   :  { %v485_v37 = vshrl.u32 %v3484_v33, %v482_v28  ;;  %v487_v38 = vshll.u32 %v3484_v33, %v481_v21  ;;  %v488_v11 = vshrl.u32 %v3482_v39, %v482_v28  ;;  %v490_v40 = vshll.u32 %v3482_v39, %v481_v21 }
  0x43   :  { %v3491_v41 = vmov 2102212464   ;;  %v3489_v46 = vmov 920167782   ;;  %v3479_v50 = vmov 1326507024   ;;  %v483_v58 = vshrl.u32 %v3486_v30, %v482_v28 }
  0x44   :  { %v486_v35 = vor.u32 %v485_v37, %v484_v31  ;;  %v491_v42 = vshrl.u32 %v3491_v41, %v482_v28  ;;  %v489_v43 = vor.u32 %v488_v11, %v487_v38  ;;  %v493_v44 = vshll.u32 %v3491_v41, %v481_v21 }
  0x45   :  { %v494_v47 = vshrl.u32 %v3489_v46, %v482_v28  ;;  %v496_v48 = vshll.u32 %v3489_v46, %v481_v21  ;;  %v497_v51 = vshrl.u32 %v3479_v50, %v482_v28  ;;  %vm499_vm1 = vcmp.lt.s32.totalorder %v480_v36, 1 }
  0x46   :  { %v492_v49 = vor.u32 %v491_v42, %v490_v40  ;;  %v2038_v52 = vshll.u32 %v475_v32, 8  ;;  %vm501_vm2 = vcmp.lt.s32.totalorder %v480_v36, 3  ;;  %v3478_v54 = vand.u32 2147483647, %v1998_v7 }
  0x47   :  { %v495_v53 = vor.u32 %v494_v47, %v493_v44  ;;  %v1830_v55 = vadd.s32 4294967169, %v625_v34  ;;  %v498_v56 = vor.u32 %v497_v51, %v496_v48  ;;  %vm500_vm3 = vcmp.lt.s32.totalorder %v480_v36, 2 }
  0x48   :  { %vm502_vm4 = vcmp.lt.s32.totalorder %v480_v36, 4  ;;  %v507_v57 = vsel %vm499_vm1, %v486_v35, %v489_v43  ;;  %v511_v61 = vsel %vm499_vm1, %v489_v43, %v492_v49  ;;  %v516_v0 = vand.u32 65535, %v2038_v52 }
  0x49   :  { %v504_v59 = vsel %vm502_vm4, %v492_v49, 2102212464  ;;  %v508_v60 = vsel %vm502_vm4, %v495_v53, 920167782  ;;  %v512_v63 = vsel %vm502_vm4, %v498_v56, 1326507024  ;;  %v2051_v8 = vcvt.s32.f32 %v1821_v29 }
  0x4a   :  { %v509_v62 = vsel %vm501_vm2, %v492_v49, %v508_v60  ;;  %v517_v1 = vshrl.u32 %v2038_v52, 16  ;;  %v2047_v2 = vadd.f32 0.5, %v278_v17  ;;  %v513_v5 = vsel %vm501_vm2, %v495_v53, %v512_v63 }
  0x4b   :  { %v510_v3 = vsel %vm500_vm3, %v507_v57, %v509_v62  ;;  %v631_v6 = vadd.s32 1, %v1830_v55  ;;  %v514_v12 = vsel %vm500_vm3, %v511_v61, %v513_v5  ;;  %v503_v21 = vsel %vm499_vm1, %v483_v58, %v486_v35 }
  0x4c   :  { %v540_v13 = vand.u32 65535, %v510_v3  ;;  %v541_v20 = vshrl.u32 %v510_v3, 16  ;;  %v505_v25 = vsel %vm501_vm2, %v489_v43, %v504_v59  ;;  %v518_v28 = vand.u32 65535, %v514_v12 }
  0x4d   :  { %v519_v31 = vshrl.u32 %v514_v12, 16  ;;  %v2058_v38 = vand.u32 8388607, %v3478_v54  ;;  %vm632_vm5 = vcmp.gt.s32.totalorder %v631_v6, 0  ;;  %v506_v34 = vsel %vm500_vm3, %v503_v21, %v505_v25 }
  0x4e   :  { %v542_v32 = vmul.u32 %v540_v13, %v516_v0  ;;  %v543_v17 = vmul.u32 %v541_v20, %v516_v0  ;;  %v544_v37 = vmul.u32 %v540_v13, %v517_v1  ;;  %v520_v11 = vmul.u32 %v518_v28, %v516_v0 }
  0x4f   :  { %v521_v29 = vmul.u32 %v519_v31, %v516_v0  ;;  %v522_v40 = vmul.u32 %v518_v28, %v517_v1  ;;  %v545_v42 = vmul.u32 %v541_v20, %v517_v1  ;;  %v523_v47 = vmul.u32 %v519_v31, %v517_v1 }
  0x50   :  { %v546_v44 = vshll.u32 %v543_v17, 16  ;;  %v548_v35 = vshll.u32 %v544_v37, 16  ;;  %v547_v49 = vshrl.u32 %v543_v17, 16  ;;  %v633_v53 = vsel %vm632_vm5, %v631_v6, 0 }
  0x51   :  { %v524_v43 = vshll.u32 %v521_v29, 16  ;;  %v526_v48 = vshll.u32 %v522_v40, 16  ;;  %v549_v56 = vshrl.u32 %v544_v37, 16  ;;  %v3493_v57 = vmov 0  }
  0x52   :  { %vm550_vm6 = vc.u32 %v542_v32, %v546_v44  ;;  %v552_v51 = vadd.s32 %v546_v44, %v542_v32  ;;  %v525_v59 = vshrl.u32 %v521_v29, 16  ;;  %v635_v63 = vand.u32 31, %v633_v53 }
  0x53   :  { %vm528_vm7 = vc.u32 %v520_v11, %v524_v43  ;;  %v530_v55 = vadd.s32 %v524_v43, %v520_v11  ;;  %v551_v58 = vsel %vm550_vm6, 1, %v3493_v57  ;;  %v527_v0 = vshrl.u32 %v522_v40, 16 }
  0x54   :  { %v529_v36 = vsel %vm528_vm7, 1, %v3493_v57  ;;  %v553_v60 = vadd.s32 %v551_v58, %v545_v42  ;;  %vm554_vm8 = vc.u32 %v552_v51, %v548_v35  ;;  %v2065_v5 = vshrl.u32 %v633_v53, 5 }
  0x55   :  { %v531_v61 = vadd.s32 %v529_v36, %v523_v47  ;;  %vm532_vm9 = vc.u32 %v530_v55, %v526_v48  ;;  %v555_v62 = vsel %vm554_vm8, 1, %v3493_v57  ;;  %v2067_v12 = vsub.s32 32, %v635_v63 }
  0x56   :  { %v533_v1 = vsel %vm532_vm9, 1, %v3493_v57  ;;  %v557_v3 = vadd.s32 %v555_v62, %v553_v60  ;;  %v638_v13 = vshll.u32 %v3486_v30, %v635_v63  ;;  %v641_v20 = vshll.u32 %v3484_v33, %v635_v63 }
  0x57   :  { %v535_v6 = vadd.s32 %v533_v1, %v531_v61  ;;  %v644_v25 = vshll.u32 %v3482_v39, %v635_v63  ;;  %v647_v28 = vshll.u32 %v3491_v41, %v635_v63  ;;  %v650_v31 = vshll.u32 %v3489_v46, %v635_v63 }
  0x58   :  { %v558_v21 = vadd.s32 %v557_v3, %v547_v49  ;;  %v2074_v17 = vadd.s32 %v552_v51, %v548_v35  ;;  %v639_v37 = vshrl.u32 %v3484_v33, %v2067_v12  ;;  %v642_v11 = vshrl.u32 %v3482_v39, %v2067_v12 }
  0x59   :  { %v536_v32 = vadd.s32 %v535_v6, %v525_v59  ;;  %v645_v40 = vshrl.u32 %v3491_v41, %v2067_v12  ;;  %v648_v42 = vshrl.u32 %v3489_v46, %v2067_v12  ;;  %v651_v44 = vshrl.u32 %v3479_v50, %v2067_v12 }
  0x5a   :  { %v559_v29 = vadd.s32 %v558_v21, %v549_v56  ;;  %v560_v35 = vmul.u32 %v2038_v52, %v506_v34  ;;  %v2089_v43 = vor.u32 %v639_v37, %v638_v13  ;;  %v2091_v48 = vor.u32 %v642_v11, %v641_v20 }
  0x5b   :  { %v2086_v47 = vadd.s32 %v536_v32, %v527_v0  ;;  %v2093_v51 = vor.u32 %v645_v40, %v644_v25  ;;  %v649_v53 = vor.u32 %v648_v42, %v647_v28  ;;  %v652_v55 = vor.u32 %v651_v44, %v650_v31 }
  0x5c   :  { %v563_v49 = vadd.s32 1, %v559_v29  ;;  %vm653_vm11 = vcmp.lt.s32.totalorder %v2065_v5, 1  ;;  %vm655_vm12 = vcmp.lt.s32.totalorder %v2065_v5, 3  ;;  %vm656_vm13 = vcmp.lt.s32.totalorder %v2065_v5, 4 }
  0x5d   :  { %vm562_vm10 = vc.u32 %v2086_v47, %v2074_v17  ;;  %v1822_v52 = vshrl.u32 %v2000_v9, 8  ;;  %v1823_v34 = vshrl.u32 %v2002_v10, 8  ;;  %v629_v58 = vor.u32 8388608, %v2058_v38 }
  0x5e   :  { %v564_v56 = vsel %vm562_vm10, %v563_v49, %v559_v29  ;;  %v325_v59 = vadd.f32 0.5, %v2051_v8  ;;  %vm654_vm14 = vcmp.lt.s32.totalorder %v2065_v5, 2  ;;  %v662_v60 = vsel %vm656_vm13, %v649_v53, 920167782 }
  0x5f   :  { %v2104_v36 = vadd.s32 %v564_v56, %v560_v35  ;;  %v661_v61 = vsel %vm653_vm11, %v2089_v43, %v2091_v48  ;;  %v663_v9 = vsel %vm655_vm12, %v2093_v51, %v662_v60  ;;  %v665_v10 = vsel %vm653_vm11, %v2091_v48, %v2093_v51 }
  0x60   :  { %v666_v8 = vsel %vm656_vm13, %v652_v55, 1326507024  ;;  %v287_v38 = vadd.f32 0.5, %v2010_v18  ;;  %v288_v62 = vadd.f32 0.5, %v2012_v19  ;;  %v289_v63 = vadd.f32 0.5, %v2016_v22 }
  0x61   :  { %v667_v0 = vsel %vm655_vm12, %v649_v53, %v666_v8  ;;  %v290_v1 = vadd.f32 0.5, %v2018_v23  ;;  %v1824_v3 = vshrl.u32 %v2004_v14, 8  ;;  %v1825_v6 = vshrl.u32 %v2006_v15, 8 }
  0x62   :  { %v2130_v13 = vshll.u32 %v629_v58, 8  ;;  %v1826_v20 = vshrl.u32 %v2008_v16, 8  ;;  %v318_v21 = vcvt.s32.f32 %v1822_v52  ;;  %v2135_v18 = vsel %vm654_vm14, %v661_v61, %v663_v9 }
  0x63   :  { %v2139_v19 = vsel %vm654_vm14, %v665_v10, %v667_v0  ;;  %v291_v22 = vmul.f32 5.9604645e-08, %v2020_v24  ;;  %v319_v23 = vcvt.s32.f32 %v1823_v34  ;;  %v333_v25 = vmul.f32 5.9604645e-08, %v325_v59 }
  0x64   :  { %v566_v14 = vadd.s32 536870912, %v2104_v36  ;;  %v292_v15 = vmul.f32 5.9604645e-08, %v2023_v26  ;;  %v293_v28 = vmul.f32 5.9604645e-08, %v2025_v27  ;;  %v294_v16 = vmul.f32 5.9604645e-08, %v2047_v2 }
  0x65   :  { %v295_v31 = vmul.f32 5.9604645e-08, %v287_v38  ;;  %v296_v32 = vmul.f32 5.9604645e-08, %v288_v62  ;;  %v670_v37 = vand.u32 65535, %v2130_v13  ;;  %v673_v11 = vshrl.u32 %v2139_v19, 16 }
  0x66   :  { %v695_v29 = vshrl.u32 %v2135_v18, 16  ;;  %v320_v40 = vcvt.s32.f32 %v1824_v3  ;;  %v321_v24 = vcvt.s32.f32 %v1825_v6  ;;  %v322_v42 = vcvt.s32.f32 %v1826_v20 }
  0x67   :  { %v326_v44 = vadd.f32 0.5, %v318_v21  ;;  %v327_v35 = vadd.f32 0.5, %v319_v23  ;;  %1860 = vlog2.f32 %v291_v22  ;;  %v2149_v49 = vmul.f32 6.2831855, %v333_v25 }
  0x68   :  { %v2151_v26 = vshrl.u32 %v566_v14, 30  ;;  %1862 = vlog2.f32 %v292_v15  ;;  %v671_v27 = vshrl.u32 %v2130_v13, 16  ;;  %v672_v2 = vand.u32 65535, %v2139_v19 }
  0x69   :  { %3539 = vst [vmem:[#allocation12_spill] sm:$0xff] %v2149_v49  ;;  %v694_v53 = vand.u32 65535, %v2135_v18  ;;  %v297_v55 = vmul.f32 5.9604645e-08, %v289_v63  ;;  %1864 = vlog2.f32 %v293_v28  ;;  %v2156_v52 = vmul.u32 %v673_v11, %v670_v37 }
  0x6a   :  { %3540 = vst [vmem:[#allocation13_spill] sm:$0xff] %v2151_v26  ;;  %v2158_v34 = vmul.u32 %v695_v29, %v670_v37  ;;  %v298_v56 = vmul.f32 5.9604645e-08, %v290_v1  ;;  %v328_v58 = vadd.f32 0.5, %v320_v40  ;;  %v329_v59 = vadd.f32 0.5, %v321_v24 }
  0x6b   :  { %v330_v60 = vadd.f32 0.5, %v322_v42  ;;  %v334_v61 = vmul.f32 5.9604645e-08, %v326_v44  ;;  %v335_v9 = vmul.f32 5.9604645e-08, %v327_v35  ;;  %1866 = vlog2.f32 %v294_v16 }
  0x6c   :  { %v568_v10 = vshll.u32 %v2151_v26, 30  ;;  %1868 = vlog2.f32 %v295_v31  ;;  %v2161_v8 = vmul.u32 %v672_v2, %v671_v27  ;;  %v2163_v38 = vmul.u32 %v694_v53, %v671_v27 }
  0x6d   :  { %v778_v62 = vand.u32 2139095040, %v2149_v49  ;;  %v1861_v63 = vpop.eup %1860  ;;  %v674_v0 = vmul.u32 %v672_v2, %v670_v37  ;;  %v678_v3 = vshll.u32 %v2156_v52, 16  ;;  %v696_v1 = vmul.u32 %v694_v53, %v670_v37 }
  0x6e   :  { %v700_v6 = vshll.u32 %v2158_v34, 16  ;;  %v1863_v20 = vpop.eup %1862  ;;  %v336_v21 = vmul.f32 5.9604645e-08, %v328_v58  ;;  %v337_v18 = vmul.f32 5.9604645e-08, %v329_v59  ;;  %1870 = vlog2.f32 %v296_v32 }
  0x6f   :  { %v779_v19 = vshrl.u32 %v778_v62, 23  ;;  %v1865_v22 = vpop.eup %1864  ;;  %v338_v23 = vmul.f32 5.9604645e-08, %v330_v60  ;;  %1872 = vlog2.f32 %v297_v55  ;;  %v2168_v25 = vmul.f32 6.2831855, %v334_v61 }
  0x70   :  { %v2171_v14 = vsub.s32 %v2104_v36, %v568_v10  ;;  %v340_v15 = vmul.f32 0.6931472, %v1861_v63  ;;  %v680_v28 = vshll.u32 %v2161_v8, 16  ;;  %v702_v16 = vshll.u32 %v2163_v38, 16 }
  0x71   :  { %3541 = vst [vmem:[#allocation14_spill] sm:$0xff] %v2168_v25  ;;  %v1833_v31 = vadd.s32 4294967169, %v779_v19  ;;  %v1867_v37 = vpop.eup %1866  ;;  %vm2175_vm15 = vc.u32 %v674_v0, %v678_v3  ;;  %v684_v32 = vadd.s32 %v678_v3, %v674_v0  ;;  %vm704_vm0 = vc.u32 %v696_v1, %v700_v6 }
  0x72   :  { %v2179_v24 = vadd.s32 %v700_v6, %v696_v1  ;;  %v1869_v42 = vpop.eup %1868  ;;  %v342_v44 = vmul.f32 0.6931472, %v1863_v20  ;;  %v344_v35 = vmul.f32 0.6931472, %v1865_v22  ;;  %1874 = vlog2.f32 %v298_v56 }
  0x73   :  { %v2181_v36 = vmul.f32 6.2831855, %v335_v9  ;;  %v571_v2 = vsub.s32 0, %v2171_v14  ;;  %v677_v53 = vmul.u32 %v673_v11, %v671_v27  ;;  %v699_v55 = vmul.u32 %v695_v29, %v671_v27 }
  0x74   :  { %v785_v58 = vadd.s32 1, %v1833_v31  ;;  %v1871_v59 = vpop.eup %1870  ;;  %v2184_v60 = vmul.f32 -2.0, %v340_v15  ;;  %vm570_vm1 = vcmp.lt.s32.totalorder %v2171_v14, 0  ;;  %v683_v61 = vsel %vm2175_vm15, 1, %v3493_v57 }
  0x75   :  { %v705_v10 = vsel %vm704_vm0, 1, %v3493_v57  ;;  %v1873_v62 = vpop.eup %1872  ;;  %v346_v56 = vmul.f32 0.6931472, %v1867_v37  ;;  %vm686_vm2 = vc.u32 %v684_v32, %v680_v28  ;;  %vm708_vm3 = vc.u32 %v2179_v24, %v702_v16 }
  0x76   :  { %vm786_vm4 = vcmp.gt.s32.totalorder %v785_v58, 0  ;;  %v2194_v11 = vmul.f32 -2.0, %v342_v44  ;;  %v2196_v29 = vmul.f32 6.2831855, %v336_v21  ;;  %v2198_v27 = vmul.f32 6.2831855, %v337_v18 }
  0x77   :  { %v787_v9 = vsel %vm786_vm4, %v785_v58, 0  ;;  %v348_v63 = vmul.f32 0.6931472, %v1869_v42  ;;  %v572_v0 = vsel %vm570_vm1, %v571_v2, %v2171_v14  ;;  %v685_v3 = vadd.s32 %v683_v61, %v677_v53 }
  0x78   :  { %3544 = vst [vmem:[#allocation15_spill] sm:$0xff] %v2196_v29  ;;  %v707_v1 = vadd.s32 %v705_v10, %v699_v55  ;;  %v1875_v6 = vpop.eup %1874  ;;  %v350_v20 = vmul.f32 0.6931472, %v1871_v59  ;;  %v687_v19 = vsel %vm686_vm2, 1, %v3493_v57  ;;  %v709_v22 = vsel %vm708_vm3, 1, %v3493_v57 }
  0x79   :  { %3545 = vst [vmem:[#allocation16_spill] sm:$0xff] %v2198_v27  ;;  %v789_v15 = vand.u32 31, %v787_v9  ;;  %v2203_v28 = vmul.f32 -2.0, %v344_v35  ;;  %v2205_v31 = vmul.f32 -2.0, %v346_v56  ;;  %1876 = vrsqrt.f32 %v2184_v60 }
  0x7a   :  { %v2208_v21 = vmul.f32 6.2831855, %v338_v23  ;;  %v352_v18 = vmul.f32 0.6931472, %v1873_v62  ;;  %v573_v40 = vclz %v572_v0  ;;  %v701_v32 = vshrl.u32 %v2158_v34, 16 }
  0x7b   :  { %v679_v42 = vshrl.u32 %v2156_v52, 16  ;;  %v689_v44 = vadd.s32 %v687_v19, %v685_v3  ;;  %v711_v2 = vadd.s32 %v709_v22, %v707_v1  ;;  %v2213_v53 = vsub.s32 32, %v789_v15 }
  0x7c   :  { %3546 = vst [vmem:[#allocation17_spill] sm:$0xff] %v2208_v21  ;;  %v2215_v35 = vmul.f32 0.6931472, %v1875_v6  ;;  %v2217_v55 = vmul.f32 -2.0, %v348_v63  ;;  %v2219_v58 = vmul.f32 -2.0, %v350_v20  ;;  %1878 = vrsqrt.f32 %v2194_v11 }
  0x7d   :  { %v637_v59 = vshrl.u32 %v3486_v30, %v2067_v12  ;;  %v658_v52 = vsel %vm656_vm13, %v2093_v51, 2102212464  ;;  %v3481_v34 = vand.u32 2147483647, %v2149_v49  ;;  %v1828_v61 = vadd.s32 4294967294, %v573_v40 }
  0x7e   :  { %3547 = vst [vmem:[#allocation18_spill] sm:$0xff] %v2219_v58  ;;  %v681_v10 = vshrl.u32 %v2161_v8, 16  ;;  %v703_v62 = vshrl.u32 %v2163_v38, 16  ;;  %v801_v56 = vshll.u32 %v3491_v41, %v789_v15  ;;  %v690_v0 = vadd.s32 %v689_v44, %v679_v42 }
  0x7f   :  { %v2232_v63 = vpop.eup %1876  ;;  %v712_v3 = vadd.s32 %v711_v2, %v701_v32  ;;  %v2234_v1 = vshrl.u32 %v787_v9, 5  ;;  %v802_v12 = vshrl.u32 %v3489_v46, %v2213_v53  ;;  %v792_v51 = vshll.u32 %v3486_v30, %v789_v15 }
  0x80   :  { %v795_v6 = vshll.u32 %v3484_v33, %v789_v15  ;;  %v804_v20 = vshll.u32 %v3489_v46, %v789_v15  ;;  %v805_v8 = vshrl.u32 %v3479_v50, %v2213_v53  ;;  %v793_v19 = vshrl.u32 %v3484_v33, %v2213_v53 }
  0x81   :  { %v796_v22 = vshrl.u32 %v3482_v39, %v2213_v53  ;;  %v798_v9 = vshll.u32 %v3482_v39, %v789_v15  ;;  %v799_v40 = vshrl.u32 %v3491_v41, %v2213_v53  ;;  %v364_v42 = vmul.f32 %v2232_v63, %v2184_v60 }
  0x82   :  { %v2250_v32 = vpop.eup %1878  ;;  %1880 = vrsqrt.f32 %v2203_v28  ;;  %v657_v44 = vsel %vm653_vm11, %v637_v59, %v2089_v43  ;;  %v803_v2 = vor.u32 %v802_v12, %v801_v56  ;;  %v659_v54 = vsel %vm655_vm12, %v2091_v48, %v658_v52 }
  0x83   :  { %v713_v15 = vadd.s32 %v712_v3, %v703_v62  ;;  %v782_v23 = vand.u32 8388607, %v3481_v34  ;;  %vm810_vm5 = vcmp.lt.s32.totalorder %v2234_v1, 4  ;;  %vm1829_vm6 = vcmp.lt.s32.totalorder %v1828_v61, 0 }
  0x84   :  { %v2264_v37 = vadd.s32 %v690_v0, %v681_v10  ;;  %v2269_v50 = vadd.s32 %v2179_v24, %v702_v16  ;;  %v806_v43 = vor.u32 %v805_v8, %v804_v20  ;;  %v2271_v59 = vmul.f32 -2.0, %v352_v18 }
  0x85   :  { %v2273_v56 = vor.u32 %v793_v19, %v792_v51  ;;  %v2275_v48 = vor.u32 %v796_v22, %v795_v6  ;;  %v2277_v52 = vor.u32 %v799_v40, %v798_v9  ;;  %1882 = vrsqrt.f32 %v2205_v31 }
  0x86   :  { %3548 = vst [vmem:[#allocation19_spill] sm:$0xff] %v2264_v37  ;;  %vm807_vm7 = vcmp.lt.s32.totalorder %v2234_v1, 1  ;;  %vm809_vm8 = vcmp.lt.s32.totalorder %v2234_v1, 3  ;;  %v816_v38 = vsel %vm810_vm5, %v803_v2, 920167782  ;;  %v2284_v16 = vsel %vm1829_vm6, 0, %v1828_v61 }
  0x87   :  { %3549 = vst [vmem:[#allocation20_spill] sm:$0xff] %v2269_v50  ;;  %v660_v24 = vsel %vm654_vm14, %v657_v44, %v659_v54  ;;  %v717_v18 = vadd.s32 1, %v713_v15  ;;  %v783_v10 = vor.u32 8388608, %v782_v23  ;;  %v365_v0 = vmul.f32 %v2232_v63, %v364_v42 }
  0x88   :  { %3550 = vst [vmem:[#allocation21_spill] sm:$0xff] %v2271_v59  ;;  %v2288_v62 = vpop.eup %1880  ;;  %1884 = vrsqrt.f32 %v2217_v55  ;;  %vm716_vm9 = vc.u32 %v2264_v37, %v2269_v50  ;;  %v820_v3 = vsel %vm810_vm5, %v806_v43, 1326507024  ;;  %v376_v61 = vmul.f32 %v2250_v32, %v2194_v11 }
  0x89   :  { %vm808_vm10 = vcmp.lt.s32.totalorder %v2234_v1, 2  ;;  %v815_v54 = vsel %vm807_vm7, %v2273_v56, %v2275_v48  ;;  %v817_v5 = vsel %vm809_vm8, %v2277_v52, %v816_v38  ;;  %1886 = vrsqrt.f32 %v2219_v58 }
  0x8a   :  { %v581_v23 = vsub.s32 4294967266, %v2284_v16  ;;  %v714_v12 = vmul.u32 %v2130_v13, %v660_v24  ;;  %v932_v51 = vand.u32 2139095040, %v2168_v25  ;;  %v718_v6 = vsel %vm716_vm9, %v717_v18, %v713_v15 }
  0x8b   :  { %v819_v20 = vsel %vm807_vm7, %v2275_v48, %v2277_v52  ;;  %v821_v8 = vsel %vm809_vm8, %v803_v2, %v820_v3  ;;  %v2316_v19 = vshll.u32 %v783_v10, 8  ;;  %v2318_v22 = vpop.eup %1882  ;;  %v2321_v9 = vmul.f32 -2.0, %v2215_v35 }
  0x8c   :  { %v366_v40 = vmul.f32 0.5, %v365_v0  ;;  %v2326_v42 = vsel %vm808_vm10, %v815_v54, %v817_v5  ;;  %v377_v44 = vmul.f32 %v2250_v32, %v376_v61  ;;  %v388_v15 = vmul.f32 %v2288_v62, %v2203_v28 }
  0x8d   :  { %3551 = vst [vmem:[#allocation22_spill] sm:$0xff] %v2321_v9  ;;  %v561_v43 = vadd.s32 %v2074_v17, %v2086_v47  ;;  %v577_v35 = vsub.s32 32, %v2284_v16  ;;  %v582_v24 = vadd.s32 127, %v581_v23  ;;  %v2337_v18 = vadd.s32 %v718_v6, %v714_v12 }
  0x8e   :  { %v2334_v38 = vpop.eup %1884  ;;  %v2341_v10 = vsel %vm808_vm10, %v819_v20, %v821_v8  ;;  %1888 = vrsqrt.f32 %v2271_v59  ;;  %v824_v0 = vand.u32 65535, %v2316_v19  ;;  %v849_v3 = vshrl.u32 %v2326_v42, 16 }
  0x8f   :  { %v933_v61 = vshrl.u32 %v932_v51, 23  ;;  %v2346_v54 = vpop.eup %1886  ;;  %v367_v17 = vsub.f32 1.5, %v366_v40  ;;  %v400_v47 = vmul.f32 %v2318_v22, %v2205_v31  ;;  %v378_v12 = vmul.f32 0.5, %v377_v44 }
  0x90   :  { %v389_v6 = vmul.f32 %v2288_v62, %v388_v15  ;;  %v412_v20 = vmul.f32 %v2334_v38, %v2217_v55  ;;  %v827_v8 = vshrl.u32 %v2341_v10, 16  ;;  %v578_v51 = vshll.u32 %v2171_v14, %v2284_v16 }
  0x91   :  { %v579_v34 = vshrl.u32 %v561_v43, %v577_v35  ;;  %v583_v40 = vshll.u32 %v582_v24, 23  ;;  %v720_v2 = vadd.s32 536870912, %v2337_v18  ;;  %v825_v13 = vshrl.u32 %v2316_v19, 16 }
  0x92   :  { %v848_v5 = vand.u32 65535, %v2326_v42  ;;  %v2361_v23 = vmul.u32 %v849_v3, %v824_v0  ;;  %v1836_v44 = vadd.s32 4294967169, %v933_v61  ;;  %v401_v15 = vmul.f32 %v2318_v22, %v400_v47 }
  0x93   :  { %v424_v39 = vmul.f32 %v2346_v54, %v2219_v58  ;;  %1890 = vrsqrt.f32 %v2321_v9  ;;  %v826_v14 = vand.u32 65535, %v2341_v10  ;;  %v368_v43 = vmul.f32 %v2232_v63, %v367_v17 }
  0x94   :  { %v2368_v16 = vpop.eup %1888  ;;  %v379_v35 = vsub.f32 1.5, %v378_v12  ;;  %v2371_v24 = vmul.f32 0.5, %v389_v6  ;;  %v2373_v42 = vmul.u32 %v827_v8, %v824_v0  ;;  %v413_v61 = vmul.f32 %v2334_v38, %v412_v20 }
  0x95   :  { %3552 = vst [vmem:[#allocation23_spill] sm:$0xff] %v2368_v16  ;;  %v580_v33 = vor.u32 %v579_v34, %v578_v51  ;;  %v584_v47 = vor.u32 4788187, %v583_v40  ;;  %v2376_v30 = vshrl.u32 %v720_v2, 30  ;;  %v850_v4 = vmul.u32 %v848_v5, %v824_v0 }
  0x96   :  { %v2378_v46 = vmul.u32 %v848_v5, %v825_v13  ;;  %v854_v10 = vshll.u32 %v2361_v23, 16  ;;  %v939_v41 = vadd.s32 1, %v1836_v44  ;;  %v2381_v57 = vmul.f32 0.5, %v401_v15 }
  0x97   :  { %3553 = vst [vmem:[#allocation24_spill] sm:$0xff] %v2376_v30  ;;  %v425_v63 = vmul.f32 %v2346_v54, %v424_v39  ;;  %v436_v17 = vmul.f32 %v2368_v16, %v2271_v59  ;;  %v2386_v12 = vmul.u32 %v826_v14, %v825_v13  ;;  %v2389_v34 = vmul.f32 %v368_v43, %v2184_v60 }
  0x98   :  { %v828_v2 = vmul.u32 %v826_v14, %v824_v0  ;;  %v832_v6 = vshll.u32 %v2373_v42, 16  ;;  %vm940_vm11 = vcmp.gt.s32.totalorder %v939_v41, 0  ;;  %v585_v20 = vand.u32 2147483647, %v584_v47 }
  0x99   :  { %v2392_v5 = vpop.eup %1890  ;;  %v587_v51 = vcvt.s32.f32 %v580_v33  ;;  %v722_v40 = vshll.u32 %v2376_v30, 30  ;;  %v941_v44 = vsel %vm940_vm11, %v939_v41, 0  ;;  %vm858_vm12 = vc.u32 %v850_v4, %v854_v10 }
  0x9a   :  { %3554 = vst [vmem:[#allocation25_spill] sm:$0xff] %v2392_v5  ;;  %v2396_v15 = vadd.s32 %v854_v10, %v850_v4  ;;  %v943_v59 = vand.u32 31, %v941_v44  ;;  %v2399_v43 = vmul.f32 %v2250_v32, %v379_v35  ;;  %v2402_v14 = vmul.f32 0.5, %v413_v61 }
  0x9b   :  { %v834_v21 = vshll.u32 %v2386_v12, 16  ;;  %vm836_vm13 = vc.u32 %v828_v2, %v832_v6  ;;  %v838_v33 = vadd.s32 %v832_v6, %v828_v2  ;;  %v853_v47 = vmul.u32 %v849_v3, %v825_v13 }
  0x9c   :  { %v2405_v49 = vsub.s32 32, %v943_v59  ;;  %v2408_v39 = vmul.f32 0.5, %v425_v63  ;;  %v2411_v4 = vmul.f32 %v2368_v16, %v436_v17  ;;  %vm469_vm14 = vcmp.lt.s32.totalorder %v1992_v45, 0 }
  0x9d   :  { %v3557_v32 = vmov 0   ;;  %v588_v61 = vmul.f32 %v587_v51, %v585_v20  ;;  %v2416_v10 = vsub.s32 %v2337_v18, %v722_v40  ;;  %v3558_v2 = vshll.u32 %v2378_v46, 16 }
  0x9e   :  { %3555 = vst [vmem:[#allocation26_spill] sm:$0xff] %v2405_v49  ;;  %v859_v35 = vsel %vm858_vm12, 1, %v3557_v32  ;;  %v831_v6 = vmul.u32 %v827_v8, %v825_v13  ;;  %v837_v63 = vsel %vm836_vm13, 1, %v3557_v32  ;;  %v3559_v41 = vmov 2102212464  }
  0x9f   :  { %3556 = vst [vmem:[#allocation27_spill] sm:$0xff] %v2411_v4  ;;  %vm862_vm15 = vc.u32 %v2396_v15, %v3558_v2  ;;  %v955_v17 = vshll.u32 %v3559_v41, %v943_v59  ;;  %v3560_v0 = vmov 920167782   ;;  %v3561_v4 = vand.u32 2147483647, %v1992_v45 }
  0xa0   :  { %v956_v16 = vshrl.u32 %v3560_v0, %v2405_v49  ;;  %vm2432_vm1 = vc.u32 %v838_v33, %v834_v21  ;;  %v861_v51 = vadd.s32 %v859_v35, %v853_v47  ;;  %v2436_v40 = vshrl.u32 %v941_v44, 5 }
  0xa1   :  { %vm2428_vm0 = vcmp.le.f32.partialorder %v3561_v4, 0.7853982  ;;  %v958_v13 = vshll.u32 %v3560_v0, %v943_v59  ;;  %vm370_vm2 = vcmp.eq.f32.partialorder %v2184_v60, inf  ;;  %v863_v8 = vsel %vm862_vm15, 1, %v3557_v32 }
  0xa2   :  { %v3566_v2 = vmov 683565275   ;;  %v3567_v27 = vmov 2475754826   ;;  %v3568_v7 = vmov 2131351028   ;;  %v953_v44 = vshrl.u32 %v3559_v41, %v2405_v49 }
  0xa3   :  { %v946_v3 = vshll.u32 %v3566_v2, %v943_v59  ;;  %v949_v4 = vshll.u32 %v3567_v27, %v943_v59  ;;  %v952_v29 = vshll.u32 %v3568_v7, %v943_v59  ;;  %v947_v21 = vshrl.u32 %v3567_v27, %v2405_v49 }
  0xa4   :  { %v950_v33 = vshrl.u32 %v3568_v7, %v2405_v49  ;;  %v3569_v47 = vmov 1326507024   ;;  %v589_v30 = vxor.u32 2147483648, %v588_v61  ;;  %v839_v0 = vadd.s32 %v837_v63, %v831_v6 }
  0xa5   :  { %v959_v35 = vshrl.u32 %v3569_v47, %v2405_v49  ;;  %v3570_v26 = vand.u32 2147483647, %v2168_v25  ;;  %v957_v50 = vor.u32 %v956_v16, %v955_v17  ;;  %v725_v59 = vsub.s32 0, %v2416_v10 }
  0xa6   :  { %v841_v27 = vsel %vm2432_vm1, 1, %v3557_v32  ;;  %vm964_vm3 = vcmp.lt.s32.totalorder %v2436_v40, 4  ;;  %vm372_vm4 = vcmp.eq.f32.partialorder %v2184_v60, 0.0  ;;  %v2462_v49 = vmul.f32 %v2392_v5, %v2321_v9 }
  0xa7   :  { %v936_v58 = vand.u32 8388607, %v3570_v26  ;;  %v960_v37 = vor.u32 %v959_v35, %v958_v13  ;;  %vm724_vm6 = vcmp.lt.s32.totalorder %v2416_v10, 0  ;;  %v855_v26 = vshrl.u32 %v2361_v23, 16 }
  0xa8   :  { %3571 = vst [vmem:[#allocation28_spill] sm:$0xff] %v2462_v49  ;;  %v865_v16 = vadd.s32 %v863_v8, %v861_v51  ;;  %vm382_vm9 = vcmp.eq.f32.partialorder %v2194_v11, inf  ;;  %v833_v6 = vshrl.u32 %v2373_v42, 16  ;;  %v2468_v63 = vor.u32 %v947_v21, %v946_v3 }
  0xa9   :  { %v2470_v17 = vor.u32 %v950_v33, %v949_v4  ;;  %v2472_v18 = vor.u32 %v953_v44, %v952_v29  ;;  %v843_v13 = vadd.s32 %v841_v27, %v839_v0  ;;  %vm961_vm11 = vcmp.lt.s32.totalorder %v2436_v40, 1 }
  0xaa   :  { %vm963_vm12 = vcmp.lt.s32.totalorder %v2436_v40, 3  ;;  %v970_v35 = vsel %vm964_vm3, %v957_v50, 920167782  ;;  %v590_v23 = vsel %vm469_vm14, %v589_v30, %v588_v61  ;;  %v726_v51 = vsel %vm724_vm6, %v725_v59, %v2416_v10 }
  0xab   :  { %v937_v42 = vor.u32 8388608, %v936_v58  ;;  %v974_v3 = vsel %vm964_vm3, %v960_v37, 1326507024  ;;  %v791_v29 = vshrl.u32 %v3566_v2, %v2213_v53  ;;  %v857_v27 = vshrl.u32 %v2378_v46, 16 }
  0xac   :  { %v866_v0 = vadd.s32 %v865_v16, %v855_v26  ;;  %vm962_vm13 = vcmp.lt.s32.totalorder %v2436_v40, 2  ;;  %vm384_vm15 = vcmp.eq.f32.partialorder %v2194_v11, 0.0  ;;  %v969_v30 = vsel %vm961_vm11, %v2468_v63, %v2470_v17 }
  0xad   :  { %v971_v58 = vsel %vm963_vm12, %v2472_v18, %v970_v35  ;;  %v973_v37 = vsel %vm961_vm11, %v2470_v17, %v2472_v18  ;;  %v975_v53 = vsel %vm963_vm12, %v957_v50, %v974_v3  ;;  %vm394_vm1 = vcmp.eq.f32.partialorder %v2203_v28, inf }
  0xae   :  { %vm406_vm6 = vcmp.eq.f32.partialorder %v2205_v31, inf  ;;  %v2506_v61 = vsel %vm2428_vm0, %v1992_v45, %v590_v23  ;;  %v727_v8 = vclz %v726_v51  ;;  %v835_v4 = vshrl.u32 %v2386_v12, 16 }
  0xaf   :  { %v844_v21 = vadd.s32 %v843_v13, %v833_v6  ;;  %v371_v33 = vsel %vm370_vm2, %v2184_v60, %v2389_v34  ;;  %v381_v50 = vmul.f32 %v2399_v43, %v2194_v11  ;;  %v812_v44 = vsel %vm810_vm5, %v2277_v52, 2102212464 }
  0xb0   :  { %v2518_v59 = vshll.u32 %v937_v42, 8  ;;  %v3572_v26 = vsub.f32 1.5, %v2371_v24  ;;  %v415_v12 = vsub.f32 1.5, %v2402_v14  ;;  %v2526_v6 = vsel %vm962_vm13, %v969_v30, %v971_v58 }
  0xb1   :  { %v2530_v34 = vsel %vm962_vm13, %v973_v37, %v975_v53  ;;  %v3573_v43 = vsub.f32 1.5, %v2381_v57  ;;  %v2537_v13 = vmul.f32 %v2506_v61, %v2506_v61  ;;  %v867_v24 = vadd.s32 %v866_v0, %v857_v27 }
  0xb2   :  { %v392_v16 = vmul.f32 %v2288_v62, %v3572_v26  ;;  %v811_v62 = vsel %vm807_vm7, %v791_v29, %v2273_v56  ;;  %vm396_vm5 = vcmp.eq.f32.partialorder %v2203_v28, 0.0  ;;  %vm408_vm2 = vcmp.eq.f32.partialorder %v2205_v31, 0.0 }
  0xb3   :  { %v404_v52 = vmul.f32 %v2318_v22, %v3573_v43  ;;  %v1831_v14 = vadd.s32 4294967294, %v727_v8  ;;  %v813_v57 = vsel %vm809_vm8, %v2275_v48, %v812_v44  ;;  %v2547_v35 = vadd.s32 %v844_v21, %v835_v4 }
  0xb4   :  { %v3574_v22 = vshll.u32 %v2378_v46, 16  ;;  %v3575_v51 = vand.u32 2147483648, %v2184_v60  ;;  %v978_v42 = vand.u32 65535, %v2518_v59  ;;  %v981_v3 = vshrl.u32 %v2530_v34, 16 }
  0xb5   :  { %v1003_v29 = vshrl.u32 %v2526_v6, 16  ;;  %v383_v48 = vsel %vm382_vm9, %v2194_v11, %v381_v50  ;;  %v393_v46 = vmul.f32 %v392_v16, %v2203_v28  ;;  %v1086_v27 = vand.u32 2139095040, %v2181_v36 }
  0xb6   :  { %v2552_v23 = vadd.s32 %v2396_v15, %v3574_v22  ;;  %v2558_v56 = vsel %vm372_vm4, %v3575_v51, %v371_v33  ;;  %v427_v15 = vsub.f32 1.5, %v2408_v39  ;;  %v405_v60 = vmul.f32 %v404_v52, %v2205_v31  ;;  %v3579_v22 = vld [vmem:[#allocation19_spill] sm:$0xff]  ;;  %v3580_v51 = vld [vmem:[#allocation20_spill] sm:$0xff] }
  0xb7   :  { %3576 = vst [vmem:[#allocation29_spill] sm:$0xff] %v2558_v56  ;;  %v416_v0 = vmul.f32 %v2334_v38, %v415_v12  ;;  %v814_v30 = vsel %vm808_vm10, %v811_v62, %v813_v57  ;;  %v871_v58 = vadd.s32 1, %v867_v24  ;;  %v603_v37 = vmul.f32 -0.00019511016, %v2537_v13 }
  0xb8   :  { %vm1832_vm7 = vcmp.lt.s32.totalorder %v1831_v14, 0  ;;  %vm870_vm8 = vc.u32 %v2547_v35, %v2552_v23  ;;  %v980_v53 = vand.u32 65535, %v2530_v34  ;;  %v979_v39 = vshrl.u32 %v2518_v59, 16 }
  0xb9   :  { %v2578_v8 = vmul.u32 %v981_v3, %v978_v42  ;;  %v1002_v4 = vand.u32 65535, %v2526_v6  ;;  %v2581_v21 = vmul.u32 %v1003_v29, %v978_v42  ;;  %v3577_v1 = vand.u32 2147483648, %v2194_v11 }
  0xba   :  { %vm418_vm10 = vcmp.eq.f32.partialorder %v2217_v55, inf  ;;  %v428_v33 = vmul.f32 %v2346_v54, %v427_v15  ;;  %v868_v50 = vmul.u32 %v2316_v19, %v814_v30  ;;  %v1087_v44 = vshrl.u32 %v1086_v27, 23 }
  0xbb   :  { %v2587_v38 = vsel %vm384_vm15, %v3577_v1, %v383_v48  ;;  %v395_v26 = vsel %vm394_vm1, %v2203_v28, %v393_v46  ;;  %v407_v16 = vsel %vm406_vm6, %v2205_v31, %v405_v60  ;;  %v417_v12 = vmul.f32 %v416_v0, %v2217_v55  ;;  %v3585_v0 = vld [vmem:[#allocation18_spill] sm:$0xff] }
  0xbc   :  { %3578 = vst [vmem:[#allocation30_spill] sm:$0xff] %v2587_v38  ;;  %v872_v11 = vsel %vm870_vm8, %v871_v58, %v867_v24  ;;  %v596_v6 = vmul.f32 -0.001358992, %v2537_v13  ;;  %v604_v34 = vadd.f32 0.008332121, %v603_v37  ;;  %v730_v43 = vsel %vm1832_vm7, 0, %v1831_v14 }
  0xbd   :  { %v982_v54 = vmul.u32 %v980_v53, %v978_v42  ;;  %v986_v19 = vshll.u32 %v2578_v8, 16  ;;  %v1004_v52 = vmul.u32 %v1002_v4, %v978_v42  ;;  %v2602_v62 = vmul.u32 %v1002_v4, %v979_v39 }
  0xbe   :  { %v1008_v57 = vshll.u32 %v2581_v21, 16  ;;  %v715_v48 = vadd.s32 %v3580_v51, %v3579_v22  ;;  %v731_v46 = vsub.s32 32, %v730_v43  ;;  %v2607_v15 = vadd.s32 %v872_v11, %v868_v50 }
  0xbf   :  { %v1839_v24 = vadd.s32 4294967169, %v1087_v44  ;;  %v3581_v27 = vand.u32 2147483648, %v2203_v28  ;;  %v3583_v60 = vand.u32 2147483648, %v2205_v31  ;;  %v2622_v30 = vmul.f32 %v428_v33, %v3585_v0 }
  0xc0   :  { %v2624_v58 = vmul.u32 %v980_v53, %v979_v39  ;;  %v597_v37 = vadd.f32 0.041655596, %v596_v6  ;;  %v605_v4 = vmul.f32 %v604_v34, %v2537_v13  ;;  %v732_v1 = vshll.u32 %v2416_v10, %v730_v43 }
  0xc1   :  { %v2613_v14 = vsel %vm396_vm5, %v3581_v27, %v395_v26  ;;  %v2619_v42 = vsel %vm408_vm2, %v3583_v60, %v407_v16  ;;  %v1093_v50 = vadd.s32 1, %v1839_v24  ;;  %v735_v28 = vsub.s32 4294967266, %v730_v43 }
  0xc2   :  { %3582 = vst [vmem:[#allocation19_spill] sm:$0xff] %v2613_v14  ;;  %vm990_vm4 = vc.u32 %v982_v54, %v986_v19  ;;  %v3517_v44 = vshll.u32 %v2602_v62, 16  ;;  %v2629_v26 = vadd.s32 %v1008_v57, %v1004_v52  ;;  %v733_v31 = vshrl.u32 %v715_v48, %v731_v46  ;;  %v3586_v48 = vld [vmem:[#allocation13_spill] sm:$0xff] }
  0xc3   :  { %3584 = vst [vmem:[#allocation20_spill] sm:$0xff] %v2619_v42  ;;  %v874_v16 = vadd.s32 536870912, %v2607_v15  ;;  %vm1012_vm9 = vc.u32 %v1004_v52, %v1008_v57  ;;  %vm1094_vm15 = vcmp.gt.s32.totalorder %v1093_v50, 0  ;;  %v985_v33 = vmul.u32 %v981_v3, %v979_v39 }
  0xc4   :  { %v988_v53 = vshll.u32 %v2624_v58, 16  ;;  %v992_v11 = vadd.s32 %v986_v19, %v982_v54  ;;  %v1095_v6 = vsel %vm1094_vm15, %v1093_v50, 0  ;;  %v991_v34 = vsel %vm990_vm4, 1, %v3557_v32 }
  0xc5   :  { %v1007_v10 = vmul.u32 %v1003_v29, %v979_v39  ;;  %v3516_v43 = vand.u32 2147483647, %v2181_v36  ;;  %v1097_v22 = vand.u32 31, %v1095_v6  ;;  %v2638_v51 = vsel %vm418_vm10, %v2217_v55, %v417_v12 }
  0xc6   :  { %v1013_v52 = vsel %vm1012_vm9, 1, %v3557_v32  ;;  %vm1016_vm1 = vc.u32 %v2629_v26, %v3517_v44  ;;  %v2646_v3 = vmul.f32 %v597_v37, %v2537_v13  ;;  %v2648_v29 = vadd.f32 -0.16666654, %v605_v4 }
  0xc7   :  { %v736_v39 = vadd.s32 127, %v735_v28  ;;  %v2650_v54 = vsub.s32 32, %v1097_v22  ;;  %v2652_v19 = vor.u32 %v733_v31, %v732_v1  ;;  %v2654_v12 = vshrl.u32 %v874_v16, 30 }
  0xc8   :  { %v993_v57 = vadd.s32 %v991_v34, %v985_v33  ;;  %vm2656_vm6 = vc.u32 %v992_v11, %v988_v53  ;;  %v1015_v27 = vadd.s32 %v1013_v52, %v1007_v10  ;;  %v1017_v60 = vsel %vm1016_vm1, 1, %v3557_v32 }
  0xc9   :  { %v1090_v37 = vand.u32 8388607, %v3516_v43  ;;  %v3589_v4 = vmov 920167782   ;;  %v3590_v28 = vmov 2475754826   ;;  %v1104_v1 = vshrl.u32 %v3568_v7, %v2650_v54 }
  0xca   :  { %v1112_v50 = vshll.u32 %v3589_v4, %v1097_v22  ;;  %v1103_v46 = vshll.u32 %v3590_v28, %v1097_v22  ;;  %v1106_v31 = vshll.u32 %v3568_v7, %v1097_v22  ;;  %v1107_v16 = vshrl.u32 %v3559_v41, %v2650_v54 }
  0xcb   :  { %v2670_v33 = vshrl.u32 %v1095_v6, 5  ;;  %v1109_v53 = vshll.u32 %v3559_v41, %v1097_v22  ;;  %v1110_v11 = vshrl.u32 %v3589_v4, %v2650_v54  ;;  %v1113_v34 = vshrl.u32 %v3569_v47, %v2650_v54 }
  0xcc   :  { %v737_v10 = vshll.u32 %v736_v39, 23  ;;  %v876_v52 = vshll.u32 %v2654_v12, 30  ;;  %v987_v43 = vshrl.u32 %v2578_v8, 16  ;;  %v995_v44 = vsel %vm2656_vm6, 1, %v3557_v32 }
  0xcd   :  { %v1009_v6 = vshrl.u32 %v2581_v21, 16  ;;  %v1019_v9 = vadd.s32 %v1017_v60, %v1015_v27  ;;  %v1091_v5 = vor.u32 8388608, %v1090_v37  ;;  %v1114_v49 = vor.u32 %v1113_v34, %v1112_v50  ;;  %v3591_v27 = vld [vmem:[#allocation26_spill] sm:$0xff] }
  0xce   :  { %v1100_v42 = vshll.u32 %v3566_v2, %v1097_v22  ;;  %v1101_v14 = vshrl.u32 %v3590_v28, %v2650_v54  ;;  %v2686_v38 = vor.u32 %v1104_v1, %v1103_v46  ;;  %v2688_v39 = vor.u32 %v1107_v16, %v1106_v31 }
  0xcf   :  { %v997_v56 = vadd.s32 %v995_v44, %v993_v57  ;;  %v1111_v8 = vor.u32 %v1110_v11, %v1109_v53  ;;  %vm1115_vm5 = vcmp.lt.s32.totalorder %v2670_v33, 1  ;;  %vm1118_vm2 = vcmp.lt.s32.totalorder %v2670_v33, 4 }
  0xd0   :  { %v738_v24 = vor.u32 4788187, %v737_v10  ;;  %v2693_v21 = vsub.s32 %v2607_v15, %v876_v52  ;;  %v945_v22 = vshrl.u32 %v3566_v2, %v3591_v27  ;;  %vm1117_vm7 = vcmp.lt.s32.totalorder %v2670_v33, 3 }
  0xd1   :  { %v1011_v46 = vshrl.u32 %v2602_v62, 16  ;;  %v1020_v60 = vadd.s32 %v1019_v9, %v1009_v6  ;;  %v1128_v44 = vsel %vm1118_vm2, %v1114_v49, 1326507024  ;;  %v2701_v57 = vshll.u32 %v1091_v5, 8 }
  0xd2   :  { %v741_v37 = vcvt.s32.f32 %v2652_v19  ;;  %v2704_v50 = vor.u32 %v1101_v14, %v1100_v42  ;;  %vm1116_vm8 = vcmp.lt.s32.totalorder %v2670_v33, 2  ;;  %v1127_v15 = vsel %vm1115_vm5, %v2686_v38, %v2688_v39 }
  0xd3   :  { %v989_v1 = vshrl.u32 %v2624_v58, 16  ;;  %v998_v31 = vadd.s32 %v997_v56, %v987_v43  ;;  %v1124_v9 = vsel %vm1118_vm2, %v1111_v8, 920167782  ;;  %v1129_v49 = vsel %vm1117_vm7, %v1111_v8, %v1128_v44  ;;  %v3595_v44 = vld [vmem:[#allocation15_spill] sm:$0xff] }
  0xd4   :  { %v739_v5 = vand.u32 2147483647, %v738_v24  ;;  %v879_v14 = vsub.s32 0, %v2693_v21  ;;  %v965_v42 = vsel %vm961_vm11, %v945_v22, %v2468_v63  ;;  %v966_v19 = vsel %vm964_vm3, %v2472_v18, 2102212464  ;;  %v3594_v22 = vld [vmem:[#allocation24_spill] sm:$0xff] }
  0xd5   :  { %vm878_vm10 = vcmp.lt.s32.totalorder %v2693_v21, 0  ;;  %v1021_v56 = vadd.s32 %v1020_v60, %v1011_v46  ;;  %v1130_v58 = vsel %vm1116_vm8, %v1127_v15, %v1129_v49  ;;  %v1132_v43 = vand.u32 65535, %v2701_v57 }
  0xd6   :  { %v1123_v16 = vsel %vm1115_vm5, %v2704_v50, %v2686_v38  ;;  %v1125_v63 = vsel %vm1117_vm7, %v2688_v39, %v1124_v9  ;;  %v1133_v53 = vshrl.u32 %v2701_v57, 16  ;;  %v1134_v18 = vand.u32 65535, %v1130_v58 }
  0xd7   :  { %v967_v11 = vsel %vm963_vm12, %v2470_v17, %v966_v19  ;;  %v2738_v34 = vadd.s32 %v998_v31, %v989_v1  ;;  %v3592_v10 = vshll.u32 %v2602_v62, 16  ;;  %v1135_v6 = vshrl.u32 %v1130_v58, 16 }
  0xd8   :  { %v3593_v8 = vsub.s32 4, %v3586_v48  ;;  %v599_v27 = vadd.f32 -0.4999988, %v2646_v3  ;;  %v745_v46 = vsub.s32 4, %v3594_v22  ;;  %v880_v17 = vsel %vm878_vm10, %v879_v14, %v2693_v21 }
  0xd9   :  { %v2743_v52 = vadd.s32 %v2629_v26, %v3592_v10  ;;  %v742_v60 = vmul.f32 %v741_v37, %v739_v5  ;;  %v1126_v62 = vsel %vm1116_vm8, %v1123_v16, %v1125_v63  ;;  %v1137_v26 = vmul.u32 %v1135_v6, %v1132_v43  ;;  %v3596_v5 = vld [vmem:[#allocation11_spill] sm:$0xff] }
  0xda   :  { %v2750_v24 = vsel %vm469_vm14, %v3593_v8, %v3586_v48  ;;  %v1240_v15 = vand.u32 2139095040, %v3595_v44  ;;  %v968_v1 = vsel %vm962_vm13, %v965_v42, %v967_v11  ;;  %v1025_v31 = vadd.s32 1, %v1021_v56 }
  0xdb   :  { %v1136_v9 = vmul.u32 %v1134_v18, %v1132_v43  ;;  %v1138_v48 = vmul.u32 %v1134_v18, %v1133_v53  ;;  %v607_v3 = vmul.f32 %v2648_v29, %v2537_v13  ;;  %v881_v49 = vclz %v880_v17 }
  0xdc   :  { %vm1024_vm14 = vc.u32 %v2738_v34, %v2743_v52  ;;  %v1140_v37 = vshll.u32 %v1137_v26, 16  ;;  %vm623_vm3 = vcmp.lt.s32.totalorder %v3596_v5, 0  ;;  %v1139_v14 = vmul.u32 %v1135_v6, %v1133_v53 }
  0xdd   :  { %v1156_v19 = vand.u32 65535, %v1126_v62  ;;  %v1157_v58 = vshrl.u32 %v1126_v62, 16  ;;  %v594_v40 = vsel %vm2428_vm0, 0, %v2750_v24  ;;  %v743_v42 = vxor.u32 2147483648, %v742_v60 }
  0xde   :  { %v1022_v16 = vmul.u32 %v2518_v59, %v968_v1  ;;  %v1241_v63 = vshrl.u32 %v1240_v15, 23  ;;  %v2772_v29 = vsel %vm623_vm3, %v745_v46, %v3594_v22  ;;  %v1026_v18 = vsel %vm1024_vm14, %v1025_v31, %v1021_v56 }
  0xdf   :  { %v1142_v11 = vshll.u32 %v1138_v48, 16  ;;  %vm1144_vm11 = vc.u32 %v1136_v9, %v1140_v37  ;;  %vm420_vm12 = vcmp.eq.f32.partialorder %v2217_v55, 0.0  ;;  %vm430_vm13 = vcmp.eq.f32.partialorder %v3585_v0, inf }
  0xe0   :  { %v600_v10 = vmul.f32 %v599_v27, %v2537_v13  ;;  %v608_v20 = vadd.f32 1.0, %v607_v3  ;;  %v1834_v6 = vadd.s32 4294967294, %v881_v49  ;;  %v1145_v8 = vsel %vm1144_vm11, 1, %v3557_v32 }
  0xe1   :  { %v1146_v59 = vadd.s32 %v1140_v37, %v1136_v9  ;;  %v1147_v24 = vadd.s32 %v1145_v8, %v1139_v14  ;;  %v1158_v17 = vmul.u32 %v1156_v19, %v1132_v43  ;;  %v1159_v62 = vmul.u32 %v1157_v58, %v1132_v43 }
  0xe2   :  { %v3597_v22 = vand.u32 2147483647, %v3596_v5  ;;  %v744_v46 = vsel %vm623_vm3, %v743_v42, %v742_v60  ;;  %v2786_v15 = vadd.s32 %v1026_v18, %v1022_v16  ;;  %v1160_v13 = vmul.u32 %v1156_v19, %v1133_v53 }
  0xe3   :  { %v1842_v27 = vadd.s32 4294967169, %v1241_v63  ;;  %v1141_v1 = vshrl.u32 %v1137_v26, 16  ;;  %vm1148_vm4 = vc.u32 %v1146_v59, %v1142_v11  ;;  %v1161_v31 = vmul.u32 %v1157_v58, %v1133_v53 }
  0xe4   :  { %vm2780_vm0 = vcmp.le.f32.partialorder %v3597_v22, 0.7853982  ;;  %v1162_v9 = vshll.u32 %v1159_v62, 16  ;;  %vm1835_vm9 = vcmp.lt.s32.totalorder %v1834_v6, 0  ;;  %v1099_v43 = vshrl.u32 %v3566_v2, %v2650_v54 }
  0xe5   :  { %v1149_v3 = vsel %vm1148_vm4, 1, %v3557_v32  ;;  %v1164_v49 = vshll.u32 %v1160_v13, 16  ;;  %v1120_v37 = vsel %vm1118_vm2, %v2688_v39, 2102212464  ;;  %v1028_v19 = vadd.s32 536870912, %v2786_v15 }
  0xe6   :  { %v1151_v60 = vadd.s32 %v1149_v3, %v1147_v24  ;;  %vm1166_vm15 = vc.u32 %v1158_v17, %v1162_v9  ;;  %v1168_v14 = vadd.s32 %v1162_v9, %v1158_v17  ;;  %v1143_v26 = vshrl.u32 %v1138_v48, 16 }
  0xe7   :  { %v1167_v53 = vsel %vm1166_vm15, 1, %v3557_v32  ;;  %v1247_v58 = vadd.s32 1, %v1842_v27  ;;  %v1163_v16 = vshrl.u32 %v1159_v62, 16  ;;  %v1119_v54 = vsel %vm1115_vm5, %v1099_v43, %v2704_v50 }
  0xe8   :  { %v1152_v42 = vadd.s32 %v1151_v60, %v1141_v1  ;;  %v1169_v63 = vadd.s32 %v1167_v53, %v1161_v31  ;;  %vm1170_vm1 = vc.u32 %v1168_v14, %v1164_v49  ;;  %v1121_v39 = vsel %vm1117_vm7, %v2686_v38, %v1120_v37 }
  0xe9   :  { %v1171_v18 = vsel %vm1170_vm1, 1, %v3557_v32  ;;  %vm1248_vm6 = vcmp.gt.s32.totalorder %v1247_v58, 0  ;;  %v1165_v11 = vshrl.u32 %v1160_v13, 16  ;;  %v3522_v8 = vand.u32 2147483647, %v3595_v44 }
  0xea   :  { %v1173_v48 = vadd.s32 %v1171_v18, %v1169_v63  ;;  %v1249_v59 = vsel %vm1248_vm6, %v1247_v58, 0  ;;  %v2804_v24 = vshrl.u32 %v1028_v19, 30  ;;  %v2806_v17 = vadd.s32 %v1152_v42, %v1143_v26 }
  0xeb   :  { %v2808_v62 = vadd.s32 %v1168_v14, %v1164_v49  ;;  %v1251_v22 = vand.u32 31, %v1249_v59  ;;  %v3600_v50 = vand.u32 2147483648, %v2217_v55  ;;  %v2821_v13 = vsel %vm430_vm13, %v3585_v0, %v2622_v30 }
  0xec   :  { %3602 = vst [vmem:[#allocation26_spill] sm:$0xff] %v2821_v13  ;;  %v1122_v27 = vsel %vm1116_vm8, %v1119_v54, %v1121_v39  ;;  %v1174_v1 = vadd.s32 %v1173_v48, %v1163_v16  ;;  %v2825_v31 = vadd.f32 1.0, %v600_v10  ;;  %v2827_v9 = vand.u32 3, %v594_v40 }
  0xed   :  { %v2815_v38 = vsel %vm420_vm12, %v3600_v50, %v2638_v51  ;;  %v748_v55 = vsel %vm2780_vm0, 0, %v2772_v29  ;;  %v2832_v51 = vsub.s32 32, %v1251_v22  ;;  %v2835_v43 = vmul.f32 %v608_v20, %v2506_v61 }
  0xee   :  { %3601 = vst [vmem:[#allocation13_spill] sm:$0xff] %v2815_v38  ;;  %v2840_v30 = vsel %vm2780_vm0, %v3596_v5, %v744_v46  ;;  %v2843_v33 = vsel %vm1835_vm9, 0, %v1834_v6  ;;  %v1175_v10 = vadd.s32 %v1174_v1, %v1165_v11  ;;  %v1030_v40 = vshll.u32 %v2804_v24, 30 }
  0xef   :  { %v1176_v3 = vmul.u32 %v2701_v57, %v1122_v27  ;;  %vm1178_vm5 = vc.u32 %v2806_v17, %v2808_v62  ;;  %v1244_v61 = vand.u32 8388607, %v3522_v8  ;;  %v2851_v20 = vshrl.u32 %v1249_v59, 5 }
  0xf0   :  { %v1179_v29 = vadd.s32 1, %v1175_v10  ;;  %v1263_v56 = vshll.u32 %v3559_v41, %v1251_v22  ;;  %v1264_v6 = vshrl.u32 %v3589_v4, %v2832_v51  ;;  %v1257_v46 = vshll.u32 %v3590_v28, %v1251_v22 }
  0xf1   :  { %v1258_v49 = vshrl.u32 %v3568_v7, %v2832_v51  ;;  %v1260_v57 = vshll.u32 %v3568_v7, %v1251_v22  ;;  %v1261_v37 = vshrl.u32 %v3559_v41, %v2832_v51  ;;  %v1254_v14 = vshll.u32 %v3566_v2, %v1251_v22 }
  0xf2   :  { %v1180_v60 = vsel %vm1178_vm5, %v1179_v29, %v1175_v10  ;;  %v1255_v19 = vshrl.u32 %v3590_v28, %v2832_v51  ;;  %v1266_v26 = vshll.u32 %v3589_v4, %v1251_v22  ;;  %v617_v53 = vxor.u32 2147483648, %v2825_v31 }
  0xf3   :  { %v889_v58 = vsub.s32 4294967266, %v2843_v33  ;;  %v2869_v42 = vsub.s32 %v2786_v15, %v1030_v40  ;;  %v1181_v16 = vadd.s32 %v1180_v60, %v1176_v3  ;;  %vm616_vm2 = vcmp.eq.s32.totalorder %v2827_v9, 2 }
  0xf4   :  { %v2874_v63 = vmul.f32 %v2840_v30, %v2840_v30  ;;  %v1245_v54 = vor.u32 8388608, %v1244_v61  ;;  %v1265_v39 = vor.u32 %v1264_v6, %v1263_v56  ;;  %v1267_v18 = vshrl.u32 %v3569_v47, %v2832_v51 }
  0xf5   :  { %v1182_v11 = vadd.s32 536870912, %v1181_v16  ;;  %v2878_v48 = vor.u32 %v1258_v49, %v1257_v46  ;;  %v1262_v59 = vor.u32 %v1261_v37, %v1260_v57  ;;  %vm1272_vm7 = vcmp.lt.s32.totalorder %v2851_v20, 4 }
  0xf6   :  { %vm613_vm8 = vcmp.eq.s32.totalorder %v2827_v9, 0  ;;  %v869_v15 = vadd.s32 %v2552_v23, %v2547_v35  ;;  %v2884_v22 = vor.u32 %v1255_v19, %v1254_v14  ;;  %v1268_v50 = vor.u32 %v1267_v18, %v1266_v26 }
  0xf7   :  { %vm1269_vm10 = vcmp.lt.s32.totalorder %v2851_v20, 1  ;;  %v885_v27 = vsub.s32 32, %v2843_v33  ;;  %v890_v1 = vadd.s32 127, %v889_v58  ;;  %v1033_v10 = vsub.s32 0, %v2869_v42 }
  0xf8   :  { %vm1271_vm14 = vcmp.lt.s32.totalorder %v2851_v20, 3  ;;  %vm1032_vm3 = vcmp.lt.s32.totalorder %v2869_v42, 0  ;;  %v1278_v40 = vsel %vm1272_vm7, %v1265_v39, 920167782  ;;  %v1282_v35 = vsel %vm1272_vm7, %v1268_v50, 1326507024 }
  0xf9   :  { %v2895_v23 = vshll.u32 %v1245_v54, 8  ;;  %v750_v3 = vmul.f32 -0.001358992, %v2874_v63  ;;  %v2898_v61 = vshrl.u32 %v1182_v11, 30  ;;  %vm1270_vm11 = vcmp.lt.s32.totalorder %v2851_v20, 2 }
  0xfa   :  { %v1281_v29 = vsel %vm1269_vm10, %v2878_v48, %v1262_v59  ;;  %v757_v56 = vmul.f32 -0.00019511016, %v2874_v63  ;;  %v1277_v6 = vsel %vm1269_vm10, %v2884_v22, %v2878_v48  ;;  %v1279_v46 = vsel %vm1271_vm14, %v1262_v59, %v1278_v40  ;;  %v3603_v40 = vld [vmem:[#allocation16_spill] sm:$0xff] }
  0xfb   :  { %v1283_v49 = vsel %vm1271_vm14, %v1265_v39, %v1282_v35  ;;  %v886_v57 = vshll.u32 %v2693_v21, %v2843_v33  ;;  %v887_v37 = vshrl.u32 %v869_v15, %v885_v27  ;;  %v891_v60 = vshll.u32 %v890_v1, 23 }
  0xfc   :  { %v1034_v14 = vsel %vm1032_vm3, %v1033_v10, %v2869_v42  ;;  %v2916_v19 = vand.u32 3, %v748_v55  ;;  %v1284_v26 = vsel %vm1270_vm11, %v1281_v29, %v1283_v49  ;;  %v1286_v58 = vand.u32 65535, %v2895_v23 }
  0xfd   :  { %v1287_v54 = vshrl.u32 %v2895_v23, 16  ;;  %v614_v18 = vxor.u32 2147483648, %v2835_v43  ;;  %v751_v11 = vadd.f32 0.041655596, %v750_v3  ;;  %v1184_v39 = vshll.u32 %v2898_v61, 30 }
  0xfe   :  { %v1280_v21 = vsel %vm1270_vm11, %v1277_v6, %v1279_v46  ;;  %v758_v33 = vadd.f32 0.008332121, %v757_v56  ;;  %v1035_v15 = vclz %v1034_v14  ;;  %v1288_v50 = vand.u32 65535, %v1284_v26 }
  0xff   :  { %v1289_v55 = vshrl.u32 %v1284_v26, 16  ;;  %v2929_v27 = vsel %vm616_vm2, %v617_v53, %v2835_v43  ;;  %v2931_v1 = vor.u32 %v887_v37, %v886_v57  ;;  %v2933_v10 = vor.u32 4788187, %v891_v60 }
 0x100   :  { %v1394_v35 = vand.u32 2139095040, %v3603_v40  ;;  %v1290_v3 = vmul.u32 %v1288_v50, %v1286_v58  ;;  %v1292_v49 = vmul.u32 %v1288_v50, %v1287_v54  ;;  %v1311_v8 = vshrl.u32 %v1280_v21, 16 }
 0x101   :  { %v1291_v29 = vmul.u32 %v1289_v55, %v1286_v58  ;;  %v2939_v56 = vsel %vm613_vm8, %v2825_v31, %v614_v18  ;;  %v752_v6 = vmul.f32 %v751_v11, %v2874_v63  ;;  %v2942_v46 = vsub.s32 %v1181_v16, %v1184_v39 }
 0x102   :  { %v1310_v43 = vand.u32 65535, %v1280_v21  ;;  %v2945_v53 = vmul.f32 %v758_v33, %v2874_v63  ;;  %v1837_v57 = vadd.s32 4294967294, %v1035_v15  ;;  %v1253_v37 = vshrl.u32 %v3566_v2, %v2832_v51 }
 0x103   :  { %v1294_v60 = vshll.u32 %v1291_v29, 16  ;;  %v895_v14 = vcvt.s32.f32 %v2931_v1  ;;  %v1293_v26 = vmul.u32 %v1289_v55, %v1287_v54  ;;  %v1296_v50 = vshll.u32 %v1292_v49, 16 }
 0x104   :  { %v1395_v38 = vshrl.u32 %v1394_v35, 23  ;;  %v893_v31 = vand.u32 2147483647, %v2933_v10  ;;  %v1274_v16 = vsel %vm1272_vm7, %v1262_v59, 2102212464  ;;  %v1313_v18 = vmul.u32 %v1311_v8, %v1286_v58 }
 0x105   :  { %vm1298_vm12 = vc.u32 %v1290_v3, %v1294_v60  ;;  %v1187_v11 = vsub.s32 0, %v2942_v46  ;;  %v1300_v21 = vadd.s32 %v1294_v60, %v1290_v3  ;;  %v1314_v33 = vmul.u32 %v1310_v43, %v1287_v54 }
 0x106   :  { %v1299_v39 = vsel %vm1298_vm12, 1, %v3557_v32  ;;  %vm1838_vm13 = vcmp.lt.s32.totalorder %v1837_v57, 0  ;;  %vm1186_vm0 = vcmp.lt.s32.totalorder %v2942_v46, 0  ;;  %v1273_v51 = vsel %vm1269_vm10, %v1253_v37, %v2884_v22 }
 0x107   :  { %v1312_v15 = vmul.u32 %v1310_v43, %v1286_v58  ;;  %v1295_v55 = vshrl.u32 %v1291_v29, 16  ;;  %v1301_v1 = vadd.s32 %v1299_v39, %v1293_v26  ;;  %vm1302_vm4 = vc.u32 %v1300_v21, %v1296_v50 }
 0x108   :  { %v1845_v59 = vadd.s32 4294967169, %v1395_v38  ;;  %v1275_v10 = vsel %vm1271_vm14, %v2878_v48, %v1274_v16  ;;  %v1303_v35 = vsel %vm1302_vm4, 1, %v3557_v32  ;;  %v1315_v3 = vmul.u32 %v1311_v8, %v1287_v54 }
 0x109   :  { %v1316_v60 = vshll.u32 %v1313_v18, 16  ;;  %v1188_v13 = vsel %vm1186_vm0, %v1187_v11, %v2942_v46  ;;  %v1297_v5 = vshrl.u32 %v1292_v49, 16  ;;  %v1305_v45 = vadd.s32 %v1303_v35, %v1301_v1 }
 0x10a   :  { %v1318_v0 = vshll.u32 %v1314_v33, 16  ;;  %v2965_v22 = vsel %vm1838_vm13, 0, %v1837_v57  ;;  %v3527_v38 = vand.u32 2147483647, %v3603_v40  ;;  %v1276_v29 = vsel %vm1270_vm11, %v1273_v51, %v1275_v10 }
 0x10b   :  { %vm1320_vm9 = vc.u32 %v1312_v15, %v1316_v60  ;;  %v1322_v58 = vadd.s32 %v1316_v60, %v1312_v15  ;;  %v1306_v48 = vadd.s32 %v1305_v45, %v1295_v55  ;;  %v1401_v8 = vadd.s32 1, %v1845_v59  ;;  %v3604_v55 = vld [vmem:[#allocation12_spill] sm:$0xff] }
 0x10c   :  { %v1321_v43 = vsel %vm1320_vm9, 1, %v3557_v32  ;;  %v1189_v54 = vclz %v1188_v13  ;;  %v1317_v37 = vshrl.u32 %v1313_v18, 16  ;;  %v753_v16 = vadd.f32 -0.4999988, %v752_v6 }
 0x10d   :  { %v1323_v26 = vadd.s32 %v1321_v43, %v1315_v3  ;;  %vm1324_vm15 = vc.u32 %v1322_v58, %v1318_v0  ;;  %v2971_v49 = vadd.s32 %v1306_v48, %v1297_v5  ;;  %v2974_v50 = vadd.s32 %v1322_v58, %v1318_v0 }
 0x10e   :  { %v1325_v57 = vsel %vm1324_vm15, 1, %v3557_v32  ;;  %vm1402_vm1 = vcmp.gt.s32.totalorder %v1401_v8, 0  ;;  %v1319_v11 = vshrl.u32 %v1314_v33, 16  ;;  %v896_v21 = vmul.f32 %v895_v14, %v893_v31 }
 0x10f   :  { %v1327_v39 = vadd.s32 %v1325_v57, %v1323_v26  ;;  %v1403_v20 = vsel %vm1402_vm1, %v1401_v8, 0  ;;  %v1023_v45 = vadd.s32 %v2743_v52, %v2738_v34  ;;  %v1043_v13 = vsub.s32 4294967266, %v2965_v22 }
 0x110   :  { %v1405_v18 = vand.u32 31, %v1403_v20  ;;  %v1840_v51 = vadd.s32 4294967294, %v1189_v54  ;;  %v1330_v5 = vmul.u32 %v2895_v23, %v1276_v29  ;;  %v1398_v0 = vand.u32 8388607, %v3527_v38 }
 0x111   :  { %v1328_v15 = vadd.s32 %v1327_v39, %v1317_v37  ;;  %vm777_vm6 = vcmp.lt.s32.totalorder %v3604_v55, 0  ;;  %vm1332_vm5 = vc.u32 %v2971_v49, %v2974_v50  ;;  %v2985_v6 = vshrl.u32 %v1403_v20, 5 }
 0x112   :  { %v2987_v14 = vsub.s32 32, %v1405_v18  ;;  %v1408_v34 = vshll.u32 %v3566_v2, %v1405_v18  ;;  %v1411_v31 = vshll.u32 %v3590_v28, %v1405_v18  ;;  %v1414_v33 = vshll.u32 %v3568_v7, %v1405_v18 }
 0x113   :  { %v1329_v52 = vadd.s32 %v1328_v15, %v1319_v11  ;;  %v1417_v23 = vshll.u32 %v3559_v41, %v1405_v18  ;;  %v1420_v35 = vshll.u32 %v3589_v4, %v1405_v18  ;;  %v1039_v3 = vsub.s32 32, %v2965_v22 }
 0x114   :  { %v1409_v1 = vshrl.u32 %v3590_v28, %v2987_v14  ;;  %v1412_v59 = vshrl.u32 %v3568_v7, %v2987_v14  ;;  %v1415_v10 = vshrl.u32 %v3559_v41, %v2987_v14  ;;  %v1418_v58 = vshrl.u32 %v3589_v4, %v2987_v14 }
 0x115   :  { %v1333_v60 = vadd.s32 1, %v1329_v52  ;;  %v1421_v29 = vshrl.u32 %v3569_v47, %v2987_v14  ;;  %v760_v48 = vadd.f32 -0.16666654, %v2945_v53  ;;  %v3605_v43 = vand.u32 2147483647, %v3604_v55 }
 0x116   :  { %v1044_v54 = vadd.s32 127, %v1043_v13  ;;  %vm1841_vm7 = vcmp.lt.s32.totalorder %v1840_v51, 0  ;;  %v1399_v37 = vor.u32 8388608, %v1398_v0  ;;  %v3015_v57 = vor.u32 %v1409_v1, %v1408_v34 }
 0x117   :  { %vm3008_vm2 = vcmp.le.f32.partialorder %v3605_v43, 0.7853982  ;;  %v1334_v26 = vsel %vm1332_vm5, %v1333_v60, %v1329_v52  ;;  %v3017_v11 = vor.u32 %v1412_v59, %v1411_v31  ;;  %v3019_v39 = vor.u32 %v1415_v10, %v1414_v33 }
 0x118   :  { %v1335_v53 = vadd.s32 %v1334_v26, %v1330_v5  ;;  %v1419_v20 = vor.u32 %v1418_v58, %v1417_v23  ;;  %v1422_v18 = vor.u32 %v1421_v29, %v1420_v35  ;;  %vm1423_vm8 = vcmp.lt.s32.totalorder %v2985_v6, 1 }
 0x119   :  { %v897_v15 = vxor.u32 2147483648, %v896_v21  ;;  %v1040_v13 = vshll.u32 %v2869_v42, %v2965_v22  ;;  %v1041_v0 = vshrl.u32 %v1023_v45, %v1039_v3  ;;  %v1192_v43 = vsel %vm1841_vm7, 0, %v1840_v51 }
 0x11a   :  { %v1336_v38 = vadd.s32 536870912, %v1335_v53  ;;  %vm1425_vm10 = vcmp.lt.s32.totalorder %v2985_v6, 3  ;;  %vm1426_vm14 = vcmp.lt.s32.totalorder %v2985_v6, 4  ;;  %v3026_v34 = vshll.u32 %v1399_v37, 8 }
 0x11b   :  { %v754_v52 = vmul.f32 %v753_v16, %v2874_v63  ;;  %v1045_v5 = vshll.u32 %v1044_v54, 23  ;;  %vm1424_vm3 = vcmp.lt.s32.totalorder %v2985_v6, 2  ;;  %v1431_v31 = vsel %vm1423_vm8, %v3015_v57, %v3017_v11 }
 0x11c   :  { %v3034_v42 = vshrl.u32 %v1336_v38, 30  ;;  %v1432_v22 = vsel %vm1426_vm14, %v1419_v20, 920167782  ;;  %v1435_v45 = vsel %vm1423_vm8, %v3017_v11, %v3019_v39  ;;  %v1436_v16 = vsel %vm1426_vm14, %v1422_v18, 1326507024 }
 0x11d   :  { %v898_v51 = vsel %vm777_vm6, %v897_v15, %v896_v21  ;;  %v1042_v33 = vor.u32 %v1041_v0, %v1040_v13  ;;  %v1197_v23 = vsub.s32 4294967266, %v1192_v43  ;;  %v1433_v38 = vsel %vm1425_vm10, %v3019_v39, %v1432_v22 }
 0x11e   :  { %v1338_v1 = vshll.u32 %v3034_v42, 30  ;;  %v1434_v59 = vsel %vm1424_vm3, %v1431_v31, %v1433_v38  ;;  %v1437_v10 = vsel %vm1425_vm10, %v1419_v20, %v1436_v16  ;;  %v1440_v35 = vand.u32 65535, %v3026_v34 }
 0x11f   :  { %v1046_v3 = vor.u32 4788187, %v1045_v5  ;;  %v1177_v21 = vadd.s32 %v2808_v62, %v2806_v17  ;;  %v1438_v60 = vsel %vm1424_vm3, %v1435_v45, %v1437_v10  ;;  %v1441_v58 = vshrl.u32 %v3026_v34, 16 }
 0x120   :  { %v1193_v29 = vsub.s32 32, %v1192_v43  ;;  %v3060_v54 = vsub.s32 %v1335_v53, %v1338_v1  ;;  %v1442_v37 = vand.u32 65535, %v1438_v60  ;;  %v1443_v26 = vshrl.u32 %v1438_v60, 16 }
 0x121   :  { %v761_v18 = vmul.f32 %v760_v48, %v2874_v63  ;;  %v3066_v20 = vsel %vm3008_vm2, %v3604_v55, %v898_v51  ;;  %v1198_v15 = vadd.s32 127, %v1197_v23  ;;  %v1465_v13 = vshrl.u32 %v1434_v59, 16 }
 0x122   :  { %3608 = vst [vmem:[#allocation24_spill] sm:$0xff] %v3066_v20  ;;  %vm1340_vm11 = vcmp.lt.s32.totalorder %v3060_v54, 0  ;;  %v1341_v17 = vsub.s32 0, %v3060_v54  ;;  %v1444_v62 = vmul.u32 %v1442_v37, %v1440_v35  ;;  %v1445_v0 = vmul.u32 %v1443_v26, %v1440_v35 }
 0x123   :  { %v1047_v5 = vand.u32 2147483647, %v1046_v3  ;;  %v1049_v53 = vcvt.s32.f32 %v1042_v33  ;;  %v1194_v31 = vshll.u32 %v2942_v46, %v1192_v43  ;;  %v3071_v22 = vmul.u32 %v1442_v37, %v1441_v58 }
 0x124   :  { %v1195_v63 = vshrl.u32 %v1177_v21, %v1193_v29  ;;  %v1342_v48 = vsel %vm1340_vm11, %v1341_v17, %v3060_v54  ;;  %v1447_v45 = vmul.u32 %v1443_v26, %v1441_v58  ;;  %v1448_v16 = vshll.u32 %v1445_v0, 16 }
 0x125   :  { %v1199_v51 = vshll.u32 %v1198_v15, 23  ;;  %v1343_v23 = vclz %v1342_v48  ;;  %v1450_v38 = vshll.u32 %v3071_v22, 16  ;;  %v1464_v1 = vand.u32 65535, %v1434_v59 }
 0x126   :  { %v3075_v10 = vadd.f32 1.0, %v754_v52  ;;  %vm1452_vm12 = vc.u32 %v1444_v62, %v1448_v16  ;;  %v1454_v60 = vadd.s32 %v1448_v16, %v1444_v62  ;;  %v1467_v3 = vmul.u32 %v1465_v13, %v1440_v35 }
 0x127   :  { %v762_v33 = vadd.f32 1.0, %v761_v18  ;;  %vm931_vm13 = vcmp.lt.s32.totalorder %v2168_v25, 0  ;;  %v1050_v46 = vmul.f32 %v1049_v53, %v1047_v5  ;;  %v1843_v43 = vadd.s32 4294967294, %v1343_v23 }
 0x128   :  { %v1453_v21 = vsel %vm1452_vm12, 1, %v3557_v32  ;;  %v3081_v29 = vmul.f32 %v3066_v20, %v3066_v20  ;;  %v1196_v37 = vor.u32 %v1195_v63, %v1194_v31  ;;  %vm1456_vm0 = vc.u32 %v1454_v60, %v1450_v38 }
 0x129   :  { %v1455_v26 = vadd.s32 %v1453_v21, %v1447_v45  ;;  %v1200_v59 = vor.u32 4788187, %v1199_v51  ;;  %v1331_v52 = vadd.s32 %v2974_v50, %v2971_v49  ;;  %vm1844_vm4 = vcmp.lt.s32.totalorder %v1843_v43, 0 }
 0x12a   :  { %v1468_v15 = vmul.u32 %v1464_v1, %v1441_v58  ;;  %v3609_v18 = vand.u32 2147483647, %v2168_v25  ;;  %v1346_v62 = vsel %vm1844_vm4, 0, %v1843_v43  ;;  %v1457_v5 = vsel %vm1456_vm0, 1, %v3557_v32 }
 0x12b   :  { %v1466_v53 = vmul.u32 %v1464_v1, %v1440_v35  ;;  %v1470_v48 = vshll.u32 %v1467_v3, 16  ;;  %v1051_v31 = vxor.u32 2147483648, %v1050_v46  ;;  %v1347_v63 = vsub.s32 32, %v1346_v62 }
 0x12c   :  { %vm3087_vm9 = vcmp.le.f32.partialorder %v3609_v18, 0.7853982  ;;  %v1351_v45 = vsub.s32 4294967266, %v1346_v62  ;;  %v1449_v16 = vshrl.u32 %v1445_v0, 16  ;;  %vm612_vm15 = vcmp.lt.s32.totalorder %v2827_v9, 2 }
 0x12d   :  { %v1203_v49 = vcvt.s32.f32 %v1196_v37  ;;  %v1407_v50 = vshrl.u32 %v3566_v2, %v2987_v14  ;;  %v1459_v51 = vadd.s32 %v1457_v5, %v1455_v26  ;;  %v1469_v23 = vmul.u32 %v1465_v13, %v1441_v58 }
 0x12e   :  { %v1348_v38 = vshll.u32 %v3060_v54, %v1346_v62  ;;  %v1349_v60 = vshrl.u32 %v1331_v52, %v1347_v63  ;;  %v1352_v43 = vadd.s32 127, %v1351_v45  ;;  %v1472_v21 = vshll.u32 %v1468_v15, 16 }
 0x12f   :  { %v1201_v18 = vand.u32 2147483647, %v1200_v59  ;;  %v1428_v35 = vsel %vm1426_vm14, %v3019_v39, 2102212464  ;;  %vm1474_vm1 = vc.u32 %v1466_v53, %v1470_v48  ;;  %v1476_v0 = vadd.s32 %v1470_v48, %v1466_v53  ;;  %v3612_v53 = vld [vmem:[#allocation17_spill] sm:$0xff] }
 0x130   :  { %v1353_v1 = vshll.u32 %v1352_v43, 23  ;;  %v1451_v37 = vshrl.u32 %v3071_v22, 16  ;;  %v1460_v20 = vadd.s32 %v1459_v51, %v1449_v16  ;;  %v1475_v14 = vsel %vm1474_vm1, 1, %v3557_v32 }
 0x131   :  { %v1427_v58 = vsel %vm1423_vm8, %v1407_v50, %v3015_v57  ;;  %v1471_v54 = vshrl.u32 %v1467_v3, 16  ;;  %v1477_v13 = vadd.s32 %v1475_v14, %v1469_v23  ;;  %vm1478_vm5 = vc.u32 %v1476_v0, %v1472_v21 }
 0x132   :  { %v1350_v26 = vor.u32 %v1349_v60, %v1348_v38  ;;  %v1354_v59 = vor.u32 4788187, %v1353_v1  ;;  %v1429_v39 = vsel %vm1425_vm10, %v3017_v11, %v1428_v35  ;;  %v1479_v52 = vsel %vm1478_vm5, 1, %v3557_v32 }
 0x133   :  { %v1052_v22 = vsel %vm931_vm13, %v1051_v31, %v1050_v46  ;;  %v1473_v62 = vshrl.u32 %v1468_v15, 16  ;;  %v1481_v5 = vadd.s32 %v1479_v52, %v1477_v13  ;;  %v1548_v48 = vand.u32 2139095040, %v3612_v53 }
 0x134   :  { %v763_v57 = vmul.f32 %v762_v33, %v2840_v30  ;;  %vm767_vm7 = vcmp.eq.s32.totalorder %v2916_v19, 0  ;;  %v911_v3 = vmul.f32 -0.00019511016, %v3081_v29  ;;  %v3114_v63 = vadd.s32 %v1460_v20, %v1451_v37 }
 0x135   :  { %v3116_v45 = vadd.s32 %v1476_v0, %v1472_v21  ;;  %v899_v11 = vsub.s32 4, %v2654_v12  ;;  %v1430_v16 = vsel %vm1424_vm3, %v1427_v58, %v1429_v39  ;;  %v1482_v46 = vadd.s32 %v1481_v5, %v1471_v54 }
 0x136   :  { %v1549_v15 = vshrl.u32 %v1548_v48, 23  ;;  %v3124_v31 = vsel %vm3087_vm9, %v2168_v25, %v1052_v22  ;;  %v1204_v30 = vmul.f32 %v1203_v49, %v1201_v18  ;;  %v1355_v33 = vand.u32 2147483647, %v1354_v59 }
 0x137   :  { %v1357_v50 = vcvt.s32.f32 %v1350_v26  ;;  %vm770_vm8 = vcmp.eq.s32.totalorder %v2916_v19, 2  ;;  %v904_v20 = vmul.f32 -0.001358992, %v3081_v29  ;;  %v1483_v51 = vadd.s32 %v1482_v46, %v1473_v62 }
 0x138   :  { %v1848_v23 = vadd.s32 4294967169, %v1549_v15  ;;  %v3132_v6 = vsel %vm612_vm15, %v2939_v56, %v2929_v27  ;;  %v912_v38 = vadd.f32 0.008332121, %v911_v3  ;;  %v1484_v60 = vmul.u32 %v3026_v34, %v1430_v16 }
 0x139   :  { %3613 = vst [vmem:[#allocation15_spill] sm:$0xff] %v3132_v6  ;;  %vm1486_vm10 = vc.u32 %v3114_v63, %v3116_v45  ;;  %v771_v49 = vxor.u32 2147483648, %v3075_v10  ;;  %v3140_v43 = vmul.f32 %v3124_v31, %v3124_v31  ;;  %v1487_v21 = vadd.s32 1, %v1483_v51 }
 0x13a   :  { %v1555_v18 = vadd.s32 1, %v1848_v23  ;;  %v768_v35 = vxor.u32 2147483648, %v763_v57  ;;  %v3145_v9 = vsel %vm777_vm6, %v899_v11, %v2654_v12  ;;  %v1205_v27 = vxor.u32 2147483648, %v1204_v30 }
 0x13b   :  { %v1358_v56 = vmul.f32 %v1357_v50, %v1355_v33  ;;  %v905_v34 = vadd.f32 0.041655596, %v904_v20  ;;  %vm1085_vm14 = vcmp.lt.s32.totalorder %v2181_v36, 0  ;;  %v1488_v0 = vsel %vm1486_vm10, %v1487_v21, %v1483_v51  ;;  %v3628_v33 = vld [vmem:[#allocation11_spill] sm:$0xff] }
 0x13c   :  { %vm1556_vm3 = vcmp.gt.s32.totalorder %v1555_v18, 0  ;;  %v913_v1 = vmul.f32 %v912_v38, %v3081_v29  ;;  %v1053_v37 = vsub.s32 4, %v2804_v24  ;;  %v1489_v14 = vadd.s32 %v1488_v0, %v1484_v60 }
 0x13d   :  { %v1557_v58 = vsel %vm1556_vm3, %v1555_v18, 0  ;;  %v3152_v54 = vsel %vm770_vm8, %v771_v49, %v763_v57  ;;  %v1065_v12 = vmul.f32 -0.00019511016, %v3140_v43  ;;  %v3529_v13 = vand.u32 2147483647, %v3612_v53 }
 0x13e   :  { %v1559_v26 = vand.u32 31, %v1557_v58  ;;  %v3614_v59 = vand.u32 2147483647, %v2181_v36  ;;  %v1206_v52 = vsel %vm1085_vm14, %v1205_v27, %v1204_v30  ;;  %v1359_v22 = vxor.u32 2147483648, %v1358_v56 }
 0x13f   :  { %v1490_v62 = vadd.s32 536870912, %v1489_v14  ;;  %v3167_v5 = vsel %vm767_vm7, %v3075_v10, %v768_v35  ;;  %vm1239_vm11 = vcmp.lt.s32.totalorder %v3595_v44, 0  ;;  %v906_v3 = vmul.f32 %v905_v34, %v3081_v29 }
 0x140   :  { %vm3158_vm6 = vcmp.le.f32.partialorder %v3614_v59, 0.7853982  ;;  %v3173_v57 = vsub.s32 32, %v1559_v26  ;;  %v914_v11 = vadd.f32 -0.16666654, %v913_v1  ;;  %v3179_v16 = vsel %vm931_vm13, %v1053_v37, %v2804_v24 }
 0x141   :  { %v3181_v46 = vshrl.u32 %v1490_v62, 30  ;;  %v1066_v10 = vadd.f32 0.008332121, %v1065_v12  ;;  %v3186_v15 = vsel %vm3158_vm6, %v2181_v36, %v1206_v52  ;;  %v3618_v30 = vand.u32 2147483647, %v3595_v44 }
 0x142   :  { %v1552_v50 = vand.u32 8388607, %v3529_v13  ;;  %v1360_v24 = vsel %vm1239_vm11, %v1359_v22, %v1358_v56  ;;  %v1562_v51 = vshll.u32 %v3566_v2, %v1559_v26  ;;  %v1571_v23 = vshll.u32 %v3559_v41, %v1559_v26 }
 0x143   :  { %3617 = vst [vmem:[#allocation16_spill] sm:$0xff] %v3181_v46  ;;  %vm3190_vm12 = vcmp.le.f32.partialorder %v3618_v30, 0.7853982  ;;  %v1492_v20 = vshll.u32 %v3181_v46, 30  ;;  %v1563_v38 = vshrl.u32 %v3590_v28, %v3173_v57  ;;  %v1565_v60 = vshll.u32 %v3590_v28, %v1559_v26 }
 0x144   :  { %v1566_v49 = vshrl.u32 %v3568_v7, %v3173_v57  ;;  %v1572_v21 = vshrl.u32 %v3589_v4, %v3173_v57  ;;  %v3208_v35 = vshrl.u32 %v1557_v58, 5  ;;  %v1568_v27 = vshll.u32 %v3568_v7, %v1559_v26 }
 0x145   :  { %v1493_v18 = vsub.s32 %v1489_v14, %v1492_v20  ;;  %v1569_v56 = vshrl.u32 %v3559_v41, %v3173_v57  ;;  %v1058_v34 = vmul.f32 -0.001358992, %v3140_v43  ;;  %v3216_v0 = vmul.f32 %v3186_v15, %v3186_v15 }
 0x146   :  { %v1574_v28 = vshll.u32 %v3589_v4, %v1559_v26  ;;  %v1575_v1 = vshrl.u32 %v3569_v47, %v3173_v57  ;;  %v1067_v37 = vmul.f32 %v1066_v10, %v3140_v43  ;;  %v1573_v58 = vor.u32 %v1572_v21, %v1571_v23 }
 0x147   :  { %vm1494_vm13 = vcmp.lt.s32.totalorder %v1493_v18, 0  ;;  %v1495_v14 = vsub.s32 0, %v1493_v18  ;;  %v3225_v7 = vsel %vm3190_vm12, %v3595_v44, %v1360_v24  ;;  %v1553_v41 = vor.u32 8388608, %v1552_v50 }
 0x148   :  { %v3227_v12 = vor.u32 %v1563_v38, %v1562_v51  ;;  %v3229_v59 = vor.u32 %v1566_v49, %v1565_v60  ;;  %v3231_v4 = vor.u32 %v1569_v56, %v1568_v27  ;;  %v1576_v26 = vor.u32 %v1575_v1, %v1574_v28 }
 0x149   :  { %v1496_v52 = vsel %vm1494_vm13, %v1495_v14, %v1493_v18  ;;  %vm1580_vm0 = vcmp.lt.s32.totalorder %v3208_v35, 4  ;;  %v1219_v47 = vmul.f32 -0.00019511016, %v3216_v0  ;;  %vm1577_vm4 = vcmp.lt.s32.totalorder %v3208_v35, 1 }
 0x14a   :  { %v1497_v22 = vclz %v1496_v52  ;;  %vm1579_vm15 = vcmp.lt.s32.totalorder %v3208_v35, 3  ;;  %v3237_v62 = vadd.f32 -0.4999988, %v906_v3  ;;  %v3240_v10 = vmul.f32 %v914_v11, %v3081_v29 }
 0x14b   :  { %v1059_v30 = vadd.f32 0.041655596, %v1058_v34  ;;  %v1586_v50 = vsel %vm1580_vm0, %v1573_v58, 920167782  ;;  %v1212_v24 = vmul.f32 -0.001358992, %v3216_v0  ;;  %v3247_v20 = vmul.f32 %v3225_v7, %v3225_v7 }
 0x14c   :  { %v1846_v51 = vadd.s32 4294967294, %v1497_v22  ;;  %v3249_v23 = vshll.u32 %v1553_v41, 8  ;;  %vm1578_vm1 = vcmp.lt.s32.totalorder %v3208_v35, 2  ;;  %v1585_v3 = vsel %vm1577_vm4, %v3227_v12, %v3229_v59 }
 0x14d   :  { %v1587_v11 = vsel %vm1579_vm15, %v3231_v4, %v1586_v50  ;;  %v1590_v38 = vsel %vm1580_vm0, %v1576_v26, 1326507024  ;;  %v3261_v60 = vadd.f32 -0.16666654, %v1067_v37  ;;  %v1220_v49 = vadd.f32 0.008332121, %v1219_v47 }
 0x14e   :  { %v1485_v21 = vadd.s32 %v3116_v45, %v3114_v63  ;;  %vm1847_vm5 = vcmp.lt.s32.totalorder %v1846_v51, 0  ;;  %v1589_v56 = vsel %vm1577_vm4, %v3229_v59, %v3231_v4  ;;  %v1591_v34 = vsel %vm1579_vm15, %v1573_v58, %v1590_v38 }
 0x14f   :  { %v1500_v27 = vsel %vm1847_vm5, 0, %v1846_v51  ;;  %v1595_v28 = vshrl.u32 %v3249_v23, 16  ;;  %v1588_v41 = vsel %vm1578_vm1, %v1585_v3, %v1587_v11  ;;  %v3275_v63 = vmul.f32 %v1059_v30, %v3140_v43 }
 0x150   :  { %v1501_v1 = vsub.s32 32, %v1500_v27  ;;  %v1502_v14 = vshll.u32 %v1493_v18, %v1500_v27  ;;  %v1505_v37 = vsub.s32 4294967266, %v1500_v27  ;;  %v1213_v45 = vadd.f32 0.041655596, %v1212_v24 }
 0x151   :  { %v1373_v52 = vmul.f32 -0.00019511016, %v3247_v20  ;;  %v1594_v26 = vand.u32 65535, %v3249_v23  ;;  %v1592_v58 = vsel %vm1578_vm1, %v1589_v56, %v1591_v34  ;;  %v1618_v50 = vand.u32 65535, %v1588_v41 }
 0x152   :  { %v1503_v47 = vshrl.u32 %v1485_v21, %v1501_v1  ;;  %v1506_v22 = vadd.s32 127, %v1505_v37  ;;  %v1221_v18 = vmul.f32 %v1220_v49, %v3216_v0  ;;  %v1596_v51 = vand.u32 65535, %v1592_v58 }
 0x153   :  { %v1597_v38 = vshrl.u32 %v1592_v58, 16  ;;  %v1619_v27 = vshrl.u32 %v1588_v41, 16  ;;  %v1366_v3 = vmul.f32 -0.001358992, %v3247_v20  ;;  %v1622_v24 = vmul.u32 %v1618_v50, %v1595_v28 }
 0x154   :  { %v1504_v30 = vor.u32 %v1503_v47, %v1502_v14  ;;  %v1507_v11 = vshll.u32 %v1506_v22, 23  ;;  %v1561_v13 = vshrl.u32 %v3566_v2, %v3173_v57  ;;  %v1598_v48 = vmul.u32 %v1596_v51, %v1594_v26 }
 0x155   :  { %v1599_v21 = vmul.u32 %v1597_v38, %v1594_v26  ;;  %v1600_v1 = vmul.u32 %v1596_v51, %v1595_v28  ;;  %v1374_v37 = vadd.f32 0.008332121, %v1373_v52  ;;  %v1620_v56 = vmul.u32 %v1618_v50, %v1594_v26 }
 0x156   :  { %v1508_v53 = vor.u32 4788187, %v1507_v11  ;;  %v1621_v34 = vmul.u32 %v1619_v27, %v1594_v26  ;;  %v1511_v6 = vcvt.s32.f32 %v1504_v30  ;;  %v1601_v49 = vmul.u32 %v1597_v38, %v1595_v28 }
 0x157   :  { %v1602_v46 = vshll.u32 %v1599_v21, 16  ;;  %v1604_v58 = vshll.u32 %v1600_v1, 16  ;;  %v1623_v25 = vmul.u32 %v1619_v27, %v1595_v28  ;;  %v1626_v14 = vshll.u32 %v1622_v24, 16 }
 0x158   :  { %v1509_v41 = vand.u32 2147483647, %v1508_v53  ;;  %v1624_v55 = vshll.u32 %v1621_v34, 16  ;;  %v1581_v47 = vsel %vm1577_vm4, %v1561_v13, %v3227_v12  ;;  %v1582_v2 = vsel %vm1580_vm0, %v3231_v4, 2102212464 }
 0x159   :  { %vm1606_vm7 = vc.u32 %v1598_v48, %v1602_v46  ;;  %v1608_v57 = vadd.s32 %v1602_v46, %v1598_v48  ;;  %vm766_vm8 = vcmp.lt.s32.totalorder %v2916_v19, 2  ;;  %v1603_v52 = vshrl.u32 %v1599_v21, 16 }
 0x15a   :  { %v1607_v26 = vsel %vm1606_vm7, 1, %v3557_v32  ;;  %vm1628_vm10 = vc.u32 %v1620_v56, %v1624_v55  ;;  %v1630_v53 = vadd.s32 %v1624_v55, %v1620_v56  ;;  %v1512_v28 = vmul.f32 %v1511_v6, %v1509_v41 }
 0x15b   :  { %v1609_v22 = vadd.s32 %v1607_v26, %v1601_v49  ;;  %vm1610_vm3 = vc.u32 %v1608_v57, %v1604_v58  ;;  %v1629_v50 = vsel %vm1628_vm10, 1, %v3557_v32  ;;  %v1625_v12 = vshrl.u32 %v1621_v34, 16 }
 0x15c   :  { %v1611_v13 = vsel %vm1610_vm3, 1, %v3557_v32  ;;  %v1631_v51 = vadd.s32 %v1629_v50, %v1623_v25  ;;  %vm1632_vm13 = vc.u32 %v1630_v53, %v1626_v14  ;;  %v1583_v48 = vsel %vm1579_vm15, %v3229_v59, %v1582_v2 }
 0x15d   :  { %v1605_v46 = vshrl.u32 %v1600_v1, 16  ;;  %v1613_v4 = vadd.s32 %v1611_v13, %v1609_v22  ;;  %v1633_v38 = vsel %vm1632_vm13, 1, %v3557_v32  ;;  %v1367_v27 = vadd.f32 0.041655596, %v1366_v3 }
 0x15e   :  { %v1375_v55 = vmul.f32 %v1374_v37, %v3247_v20  ;;  %v1627_v6 = vshrl.u32 %v1622_v24, 16  ;;  %v1635_v30 = vadd.s32 %v1633_v38, %v1631_v51  ;;  %vm3536_vm0 = vcmp.lt.s32.totalorder %v3603_v40, 0 }
 0x15f   :  { %v1513_v11 = vxor.u32 2147483648, %v1512_v28  ;;  %v1614_v21 = vadd.s32 %v1613_v4, %v1603_v52  ;;  %v3301_v56 = vadd.s32 %v1630_v53, %v1626_v14  ;;  %v1214_v25 = vmul.f32 %v1213_v45, %v3216_v0 }
 0x160   :  { %v1222_v34 = vadd.f32 -0.16666654, %v1221_v18  ;;  %v1584_v59 = vsel %vm1578_vm1, %v1581_v47, %v1583_v48  ;;  %v1636_v1 = vadd.s32 %v1635_v30, %v1625_v12  ;;  %v908_v32 = vmul.f32 %v3237_v62, %v3081_v29 }
 0x161   :  { %v916_v3 = vadd.f32 1.0, %v3240_v10  ;;  %v1061_v24 = vadd.f32 -0.4999988, %v3275_v63  ;;  %v3310_v37 = vadd.s32 %v1614_v21, %v1605_v46  ;;  %v1069_v49 = vmul.f32 %v3261_v60, %v3140_v43 }
 0x162   :  { %v1368_v58 = vmul.f32 %v1367_v27, %v3247_v20  ;;  %v1376_v45 = vadd.f32 -0.16666654, %v1375_v55  ;;  %v1637_v18 = vadd.s32 %v1636_v1, %v1627_v6  ;;  %v3621_v35 = vand.u32 2147483647, %v3603_v40  ;;  %v3626_v1 = vld [vmem:[#allocation18_spill] sm:$0xff] }
 0x163   :  { %v1514_v29 = vsel %vm3536_vm0, %v1513_v11, %v1512_v28  ;;  %v1638_v62 = vmul.u32 %v3249_v23, %v1584_v59  ;;  %vm1640_vm15 = vc.u32 %v3310_v37, %v3301_v56  ;;  %v1207_v10 = vsub.s32 4, %v2898_v61 }
 0x164   :  { %vm3317_vm4 = vcmp.le.f32.partialorder %v3621_v35, 0.7853982  ;;  %v1215_v60 = vadd.f32 -0.4999988, %v1214_v25  ;;  %v1223_v63 = vmul.f32 %v1222_v34, %v3216_v0  ;;  %v1641_v14 = vadd.s32 1, %v1637_v18 }
 0x165   :  { %v3332_v47 = vsel %vm766_vm8, %v3167_v5, %v3152_v54  ;;  %v909_v2 = vadd.f32 1.0, %v908_v32  ;;  %v3624_v23 = vsel %vm3008_vm2, 0, %v3145_v9  ;;  %v1361_v52 = vsub.s32 4, %v3034_v42  ;;  %v3625_v54 = vld [vmem:[#allocation24_spill] sm:$0xff]  ;;  %v3627_v32 = vld [vmem:[#allocation10_spill] sm:$0xff] }
 0x166   :  { %v3338_v57 = vand.u32 3, %v3624_v23  ;;  %v1369_v26 = vadd.f32 -0.4999988, %v1368_v58  ;;  %v1377_v53 = vmul.f32 %v1376_v45, %v3247_v20  ;;  %v3345_v28 = vsel %vm3317_vm4, %v3603_v40, %v1514_v29 }
 0x167   :  { %v1642_v19 = vsel %vm1640_vm15, %v1641_v14, %v1637_v18  ;;  %v917_v5 = vmul.f32 %v916_v3, %v3625_v54  ;;  %v1056_v8 = vsel %vm3087_vm9, 0, %v3179_v16  ;;  %v1062_v9 = vmul.f32 %v1061_v24, %v3140_v43  ;;  %v3629_v3 = vld [vmem:[#allocation12_spill] sm:$0xff]  ;;  %v3630_v24 = vld [vmem:[#allocation14_spill] sm:$0xff] }
 0x168   :  { %v1643_v22 = vadd.s32 %v1642_v19, %v1638_v62  ;;  %v1070_v50 = vadd.f32 1.0, %v1069_v49  ;;  %v1208_v13 = vsel %vm1085_vm14, %v1207_v10, %v2898_v61  ;;  %v1216_v12 = vmul.f32 %v1215_v60, %v3216_v0 }
 0x169   :  { %v1224_v51 = vadd.f32 1.0, %v1223_v63  ;;  %v925_v48 = vxor.u32 2147483648, %v909_v2  ;;  %v1362_v46 = vsel %vm1239_vm11, %v1361_v52, %v3034_v42  ;;  %v3361_v17 = vmul.f32 %v3345_v28, %v3345_v28 }
 0x16a   :  { %v1644_v16 = vadd.s32 536870912, %v1643_v22  ;;  %vm924_vm2 = vcmp.eq.s32.totalorder %v3338_v57, 2  ;;  %v1073_v43 = vand.u32 3, %v1056_v8  ;;  %v1370_v4 = vmul.f32 %v1369_v26, %v3247_v20 }
 0x16b   :  { %v1378_v38 = vadd.f32 1.0, %v1377_v53  ;;  %vm921_vm9 = vcmp.eq.s32.totalorder %v3338_v57, 0  ;;  %v1063_v61 = vadd.f32 1.0, %v1062_v9  ;;  %v1210_v0 = vsel %vm3158_vm6, 0, %v1208_v13  ;;  %v3631_v13 = vld [vmem:[#allocation16_spill] sm:$0xff] }
 0x16c   :  { %v3368_v27 = vshrl.u32 %v1644_v16, 30  ;;  %vm920_vm14 = vcmp.lt.s32.totalorder %v3338_v57, 2  ;;  %v1071_v42 = vmul.f32 %v1070_v50, %v3124_v31  ;;  %v1217_v55 = vadd.f32 1.0, %v1216_v12  ;;  %v3632_v57 = vld [vmem:[#allocation26_spill] sm:$0xff] }
 0x16d   :  { %v1225_v6 = vmul.f32 %v1224_v51, %v3186_v15  ;;  %v1364_v30 = vsel %vm3190_vm12, 0, %v1362_v46  ;;  %v922_v20 = vxor.u32 2147483648, %v917_v5  ;;  %v926_v11 = vsel %vm924_vm2, %v925_v48, %v917_v5 }
 0x16e   :  { %v1527_v21 = vmul.f32 -0.00019511016, %v3361_v17  ;;  %v1646_v25 = vshll.u32 %v3368_v27, 30  ;;  %vm1074_vm11 = vcmp.lt.s32.totalorder %v1073_v43, 2  ;;  %v1227_v39 = vand.u32 3, %v1210_v0 }
 0x16f   :  { %v1371_v34 = vadd.f32 1.0, %v1370_v4  ;;  %v1379_v59 = vmul.f32 %v1378_v38, %v3225_v7  ;;  %vm432_vm6 = vcmp.eq.f32.partialorder %v3626_v1, 0.0  ;;  %vm1075_vm1 = vcmp.eq.s32.totalorder %v1073_v43, 0 }
 0x170   :  { %vm1078_vm5 = vcmp.eq.s32.totalorder %v1073_v43, 2  ;;  %v1381_v31 = vand.u32 3, %v1364_v30  ;;  %v1647_v15 = vsub.s32 %v1643_v22, %v1646_v25  ;;  %vm610_vm7 = vweird.f32 %v3627_v32  ;;  %v3639_v32 = vld [vmem:[#allocation29_spill] sm:$0xff] }
 0x171   :  { %vm764_vm12 = vweird.f32 %v3628_v33  ;;  %v1076_v49 = vxor.u32 2147483648, %v1071_v42  ;;  %v1079_v58 = vxor.u32 2147483648, %v1063_v61  ;;  %v1230_v45 = vxor.u32 2147483648, %v1225_v6 }
 0x172   :  { %v1233_v18 = vxor.u32 2147483648, %v1217_v55  ;;  %v1520_v7 = vmul.f32 -0.001358992, %v3361_v17  ;;  %v1528_v35 = vadd.f32 0.008332121, %v1527_v21  ;;  %vm1648_vm3 = vcmp.lt.s32.totalorder %v1647_v15, 0 }
 0x173   :  { %v1649_v29 = vsub.s32 0, %v1647_v15  ;;  %vm1229_vm13 = vcmp.eq.s32.totalorder %v1227_v39, 0  ;;  %vm1232_vm15 = vcmp.eq.s32.totalorder %v1227_v39, 2  ;;  %v1384_v62 = vxor.u32 2147483648, %v1379_v59 }
 0x174   :  { %v1387_v10 = vxor.u32 2147483648, %v1371_v34  ;;  %v923_v60 = vsel %vm921_vm9, %v909_v2, %v922_v20  ;;  %vm1383_vm2 = vcmp.eq.s32.totalorder %v1381_v31, 0  ;;  %vm1386_vm0 = vcmp.eq.s32.totalorder %v1381_v31, 2 }
 0x175   :  { %v1650_v63 = vsel %vm1648_vm3, %v1649_v29, %v1647_v15  ;;  %v1077_v14 = vsel %vm1075_vm1, %v1063_v61, %v1076_v49  ;;  %v1080_v23 = vsel %vm1078_vm5, %v1079_v58, %v1071_v42  ;;  %vm1228_vm10 = vcmp.lt.s32.totalorder %v1227_v39, 2  ;;  %v3637_v39 = vld [vmem:[#allocation27_spill] sm:$0xff]  ;;  %v3642_v49 = vld [vmem:[#allocation20_spill] sm:$0xff] }
 0x176   :  { %v1651_v52 = vclz %v1650_v63  ;;  %v1231_v26 = vsel %vm1229_vm13, %v1217_v55, %v1230_v45  ;;  %v1234_v53 = vsel %vm1232_vm15, %v1233_v18, %v1225_v6  ;;  %v1521_v19 = vadd.f32 0.041655596, %v1520_v7  ;;  %v3634_v55 = vld [vmem:[#allocation15_spill] sm:$0xff]  ;;  %v3643_v45 = vld [vmem:[#allocation13_spill] sm:$0xff] }
 0x177   :  { %v1529_v54 = vmul.f32 %v1528_v35, %v3361_v17  ;;  %vm1382_vm8 = vcmp.lt.s32.totalorder %v1381_v31, 2  ;;  %v1385_v5 = vsel %vm1383_vm2, %v1371_v34, %v1384_v62  ;;  %v1388_v8 = vsel %vm1386_vm0, %v1387_v10, %v1379_v59  ;;  %v3645_v63 = vld [vmem:[#allocation25_spill] sm:$0xff] }
 0x178   :  { %v1849_v9 = vadd.s32 4294967294, %v1651_v52  ;;  %v927_v2 = vsel %vm920_vm14, %v923_v60, %v926_v11  ;;  %v1081_v22 = vsel %vm1074_vm11, %v1077_v14, %v1080_v23  ;;  %vm1226_vm9 = vweird.f32 %v2181_v36  ;;  %v3640_v36 = vld [vmem:[#allocation30_spill] sm:$0xff]  ;;  %v3644_v60 = vld [vmem:[#allocation28_spill] sm:$0xff] }
 0x179   :  { %vm1380_vm1 = vweird.f32 %v3595_v44  ;;  %v1235_v50 = vsel %vm1228_vm10, %v1231_v26, %v1234_v53  ;;  %v1515_v12 = vsub.s32 4, %v3631_v13  ;;  %v1639_v51 = vadd.s32 %v3301_v56, %v3310_v37 }
 0x17a   :  { %vm1850_vm5 = vcmp.lt.s32.totalorder %v1849_v9, 0  ;;  %v1389_v48 = vsel %vm1382_vm8, %v1385_v5, %v1388_v8  ;;  %v1522_v46 = vmul.f32 %v1521_v19, %v3361_v17  ;;  %v1530_v16 = vadd.f32 -0.16666654, %v1529_v54 }
 0x17b   :  { %v1654_v4 = vsel %vm1850_vm5, 0, %v1849_v9  ;;  %v3633_v43 = vand.u32 2147483648, %v3626_v1  ;;  %v620_v6 = vsel %vm610_vm7, nan, %v3634_v55  ;;  %v774_v56 = vsel %vm764_vm12, nan, %v3332_v47 }
 0x17c   :  { %v1655_v61 = vsub.s32 32, %v1654_v4  ;;  %v1656_v0 = vshll.u32 %v1647_v15, %v1654_v4  ;;  %v1659_v42 = vsub.s32 4294967266, %v1654_v4  ;;  %vm3635_vm0 = vweird.f32 %v3629_v3 }
 0x17d   :  { %v434_v38 = vsel %vm432_vm6, %v3633_v43, %v3632_v57  ;;  %v928_v37 = vsel %vm3635_vm0, nan, %v927_v2  ;;  %vm3636_vm14 = vweird.f32 %v3630_v24  ;;  %v1236_v20 = vsel %vm1226_vm9, nan, %v1235_v50  ;;  %v3641_v24 = vld [vmem:[#allocation19_spill] sm:$0xff]  ;;  %v1707_v50 = vld [vmem:[#allocation4] sm:$0xff] }
 0x17e   :  { %v1082_v30 = vsel %vm3636_vm14, nan, %v1081_v22  ;;  %v1390_v11 = vsel %vm1380_vm1, nan, %v1389_v48  ;;  %v1657_v21 = vshrl.u32 %v1639_v51, %v1655_v61  ;;  %v1660_v25 = vadd.s32 127, %v1659_v42 }
 0x17f   :  { %v438_v34 = vmul.f32 0.5, %v3637_v39  ;;  %vm3638_vm11 = vcmp.lt.s32.totalorder %v3603_v40, 0  ;;  %v1523_v59 = vadd.f32 -0.4999988, %v1522_v46  ;;  %v1531_v1 = vmul.f32 %v1530_v16, %v3361_v17 }
 0x180   :  { %v1516_v47 = vsel %vm3638_vm11, %v1515_v12, %v3631_v13  ;;  %v1658_v31 = vor.u32 %v1657_v21, %v1656_v0  ;;  %v1661_v15 = vshll.u32 %v1660_v25, 23  ;;  %v1699_v33 = vmul.f32 %v620_v6, %v3639_v32  ;;  %v3646_v12 = vld [vmem:[#allocation17_spill] sm:$0xff] }
 0x181   :  { %v1700_v3 = vmul.f32 %v774_v56, %v3640_v36  ;;  %v1701_v44 = vmul.f32 %v928_v37, %v3641_v24  ;;  %v1702_v58 = vmul.f32 %v1082_v30, %v3642_v49  ;;  %v1703_v18 = vmul.f32 %v1236_v20, %v3643_v45  ;;  %v3650_v20 = vld [vmem:[#allocation23_spill] sm:$0xff] }
 0x182   :  { %v1704_v7 = vmul.f32 %v1390_v11, %v434_v38  ;;  %v1518_v35 = vsel %vm3317_vm4, 0, %v1516_v47  ;;  %v1662_v29 = vor.u32 4788187, %v1661_v15  ;;  %v1665_v62 = vcvt.s32.f32 %v1658_v31  ;;  %v3651_v31 = vld [vmem:[#allocation21_spill] sm:$0xff] }
 0x183   :  { %v1709_v10 = vmul.f32 0.1, %v1699_v33  ;;  %v449_v14 = vmul.f32 %v3645_v63, %v3644_v60  ;;  %v1710_v23 = vmul.f32 0.1, %v1700_v3  ;;  %v1711_v52 = vmul.f32 0.1, %v1701_v44 }
 0x184   :  { %v1712_v26 = vmul.f32 0.1, %v1702_v58  ;;  %v1524_v53 = vmul.f32 %v1523_v59, %v3361_v17  ;;  %v1663_v19 = vand.u32 2147483647, %v1662_v29  ;;  %v1713_v54 = vmul.f32 0.1, %v1703_v18 }
 0x185   :  { %v1714_v5 = vmul.f32 0.1, %v1704_v7  ;;  %v1532_v8 = vadd.f32 1.0, %v1531_v1  ;;  %v1725_v9 = vrot.slane %v1710_v23, 6  ;;  %v1726_v2 = vrot.slane %v1711_v52, 4 }
 0x186   :  { %v1727_v22 = vrot.slane %v1712_v26, 2  ;;  %v1666_v41 = vmul.f32 %v1665_v62, %v1663_v19  ;;  %vm1731_vm4 = vcmask 1041408   ;;  %vm1733_vm6 = vcmask 1045508   ;;  %v3652_v62 = vld [vmem:[#allocation22_spill] sm:$0xff] }
 0x187   :  { %v1728_v13 = vrot.slane %v1714_v5, 6  ;;  %vm1547_vm7 = vcmp.lt.s32.totalorder %v3646_v12, 0  ;;  %v1732_v51 = vsel %vm1731_vm4, %v1709_v10, %v1725_v9  ;;  %vm1735_vm12 = vcmask 1043456  }
 0x188   :  { %v1734_v48 = vsel %vm1733_vm6, %v1726_v2, %v1727_v22  ;;  %v3647_v17 = vand.u32 2147483647, %v3646_v12  ;;  %v1667_v16 = vxor.u32 2147483648, %v1666_v41  ;;  %v439_v43 = vsub.f32 1.5, %v438_v34 }
 0x189   :  { %v1736_v4 = vsel %vm1735_vm12, %v1732_v51, %v1734_v48  ;;  %v3441_v57 = vsel %vm1731_vm4, %v1713_v54, %v1728_v13  ;;  %v1525_v38 = vadd.f32 1.0, %v1524_v53  ;;  %v1533_v0 = vmul.f32 %v1532_v8, %v3345_v28 }
 0x18a   :  { %vm3436_vm8 = vcmp.le.f32.partialorder %v3647_v17, 0.7853982  ;;  %v1742_v61 = vadd.f32 %v1736_v4, %v1707_v50  ;;  %v1535_v42 = vand.u32 3, %v1518_v35  ;;  %v1668_v55 = vsel %vm1547_vm7, %v1667_v16, %v1666_v41  ;;  %v1708_v17 = vld [vmem:[#allocation4 + $0x8] sm:$0xff] }
 0x18b   :  { %v450_v6 = vmul.f32 0.5, %v449_v14  ;;  %v1669_v56 = vsub.s32 4, %v3368_v27  ;;  %v1671_v37 = vsel %vm3436_vm8, %v3646_v12, %v1668_v55  ;;  %v440_v11 = vmul.f32 %v3650_v20, %v439_v43 }
 0x18c   :  { %1744 = vst [vmem:[#allocation7] sm:$0xff] %v1742_v61  ;;  %v1673_v30 = vmul.f32 %v1671_v37, %v1671_v37  ;;  %v1541_v21 = vxor.u32 2147483648, %v1525_v38  ;;  %v1538_v25 = vxor.u32 2147483648, %v1533_v0  ;;  %vm1540_vm10 = vcmp.eq.s32.totalorder %v1535_v42, 2 }
 0x18d   :  { %v451_v34 = vsub.f32 1.5, %v450_v6  ;;  %vm1537_vm3 = vcmp.eq.s32.totalorder %v1535_v42, 0  ;;  %v1670_v47 = vsel %vm1547_vm7, %v1669_v56, %v3368_v27  ;;  %v441_v15 = vmul.f32 %v440_v11, %v3651_v31 }
 0x18e   :  { %v1674_v39 = vmul.f32 -0.001358992, %v1673_v30  ;;  %v1681_v28 = vmul.f32 -0.00019511016, %v1673_v30  ;;  %vm442_vm13 = vcmp.eq.f32.partialorder %v3651_v31, inf  ;;  %vm1536_vm15 = vcmp.lt.s32.totalorder %v1535_v42, 2 }
 0x18f   :  { %v1542_v32 = vsel %vm1540_vm10, %v1541_v21, %v1533_v0  ;;  %v1539_v33 = vsel %vm1537_vm3, %v1525_v38, %v1538_v25  ;;  %v1672_v36 = vsel %vm3436_vm8, 0, %v1670_v47  ;;  %v452_v44 = vmul.f32 %v3645_v63, %v451_v34 }
 0x190   :  { %v1675_v59 = vadd.f32 0.041655596, %v1674_v39  ;;  %v1682_v1 = vadd.f32 0.008332121, %v1681_v28  ;;  %vm444_vm2 = vcmp.eq.f32.partialorder %v3651_v31, 0.0  ;;  %v445_v27 = vand.u32 2147483648, %v3651_v31 }
 0x191   :  { %v443_v45 = vsel %vm442_vm13, %v3651_v31, %v441_v15  ;;  %vm1534_vm9 = vweird.f32 %v3603_v40  ;;  %v1543_v18 = vsel %vm1536_vm15, %v1539_v33, %v1542_v32  ;;  %v1689_v7 = vand.u32 3, %v1672_v36 }
 0x192   :  { %v1676_v3 = vmul.f32 %v1675_v59, %v1673_v30  ;;  %v1683_v24 = vmul.f32 %v1682_v1, %v1673_v30  ;;  %v453_v10 = vmul.f32 %v452_v44, %v3652_v62  ;;  %vm454_vm1 = vcmp.eq.f32.partialorder %v3652_v62, inf }
 0x193   :  { %v446_v60 = vsel %vm444_vm2, %v445_v27, %v443_v45  ;;  %v1544_v63 = vsel %vm1534_vm9, nan, %v1543_v18  ;;  %vm1694_vm5 = vcmp.eq.s32.totalorder %v1689_v7, 2  ;;  %v457_v52 = vand.u32 2147483648, %v3652_v62 }
 0x194   :  { %v1677_v49 = vadd.f32 -0.4999988, %v1676_v3  ;;  %v1684_v58 = vadd.f32 -0.16666654, %v1683_v24  ;;  %v455_v19 = vsel %vm454_vm1, %v3652_v62, %v453_v10  ;;  %vm456_vm0 = vcmp.eq.f32.partialorder %v3652_v62, 0.0 }
 0x195   :  { %vm1691_vm14 = vcmp.eq.s32.totalorder %v1689_v7, 0  ;;  %v1705_v40 = vmul.f32 %v1544_v63, %v446_v60  ;;  %vm1690_vm11 = vcmp.lt.s32.totalorder %v1689_v7, 2  ;;  %vm1688_vm4 = vweird.f32 %v3646_v12 }
 0x196   :  { %v1678_v35 = vmul.f32 %v1677_v49, %v1673_v30  ;;  %v1685_v29 = vmul.f32 %v1684_v58, %v1673_v30  ;;  %v458_v8 = vsel %vm456_vm0, %v457_v52, %v455_v19 }
 0x197   :  { %v1715_v22 = vmul.f32 0.1, %v1705_v40 }
 0x198   :  { %v1679_v14 = vadd.f32 1.0, %v1678_v35  ;;  %v1686_v23 = vadd.f32 1.0, %v1685_v29 }
 0x199   :  { %v1729_v51 = vrot.slane %v1715_v22, 4 }
 0x19a   :  { %v1687_v26 = vmul.f32 %v1686_v23, %v1671_v37  ;;  %v1695_v53 = vxor.u32 2147483648, %v1679_v14 }
 0x19c   :  { %v1692_v54 = vxor.u32 2147483648, %v1687_v26  ;;  %v1696_v5 = vsel %vm1694_vm5, %v1695_v53, %v1687_v26 }
 0x19e   :  { %v1693_v9 = vsel %vm1691_vm14, %v1679_v14, %v1692_v54 }
 0x19f   :  { %v1697_v2 = vsel %vm1690_vm11, %v1693_v9, %v1696_v5 }
 0x1a0   :  { %v1698_v41 = vsel %vm1688_vm4, nan, %v1697_v2 }
 0x1a1   :  { %v1706_v50 = vmul.f32 %v1698_v41, %v458_v8 }
 0x1a3   :  { %v1716_v13 = vmul.f32 0.1, %v1706_v50 }
 0x1a5   :  { %v1730_v48 = vrot.slane %v1716_v13, 2 }
 0x1a7   :  { %v1738_v46 = vsel %vm1733_vm6, %v1729_v51, %v1730_v48 }
 0x1a8   :  { %v1739_v12 = vsel %vm1735_vm12, %v3441_v57, %v1738_v46 }
 0x1a9   :  { %v1743_v16 = vadd.f32 %v1739_v12, %v1708_v17 }
 0x1ab   :  { %1745 = vst [vmem:[#allocation7 + $0x8] sm:$0xff] %v1743_v16 }
 0x1ac   :  { %1756 = dma.vmem_to_hbm [thread:$0]  %s1752_s1, 256, %s1754_s19, [#allocation6]  }
 0x1ad   :  { %1942 = dma.done.wait [#allocation6], 256  }
 0x1ae   :  { %1943 = vsyncadd [#allocation6], 4294967040 }
 0x1af   :  { %1761 = vsyncpa [#allocation5], 1 }
 0x1b0   :  { %1762 = vsyncpa [#allocation6], 1 }

</bundles_post_ra>
